<compile_context>
chip_gen: v7x
topology: tpu7x:2x2x1
jax: 0.10.0
libtpu: 0.0.40
codegen_flags: <defaults>
</compile_context>

<pallas_src>
import functools

import jax
import jax.numpy as jnp
from jax.experimental import pallas as pl
from jax.experimental.pallas import tpu as pltpu

# logical sizes (match the PyTorch module)
D_IN = 28 * 28          # 784
D_H = 20 * 20           # 400
D_Z = 20

# lane-padded sizes (multiples of 128)
D_IN_P = 896            # 7 * 128
D_H_P = 512             # 4 * 128
D_Z_P = 128             # mu / logvar each padded to one full lane tile
D_MS_P = 2 * D_Z_P      # fused [mu | logvar] slab


def _round_up(x, m):
    return (x + m - 1) // m * m


def vae_kernel(x_ref, eps_ref,
               w1_ref, b1_ref,
               wms_ref, bms_ref,
               w2_ref, b2_ref,
               w3_ref, b3_ref,
               recon_ref, ms_ref):
    # encode: h1 = relu(x @ W1 + b1)  (bf16 MXU inputs, f32 accumulation)
    h1 = jnp.dot(x_ref[...], w1_ref[...], preferred_element_type=jnp.float32)
    h1 = jnp.maximum(h1 + b1_ref[...], 0.0)                        # (TB, 512) f32

    # fused mu/logvar: one lane-dense matmul -> (TB, 256) slab.
    # Padding lanes of wms/bms are exactly zero, so ms padding lanes are 0.
    ms = jnp.dot(h1.astype(jnp.bfloat16), wms_ref[...],
                 preferred_element_type=jnp.float32) + bms_ref[...]
    ms_ref[...] = ms                                               # lane-dense store

    mu_pad = ms[:, :D_Z_P]       # tile-aligned slices (no masked lanes)
    lv_pad = ms[:, D_Z_P:]       # padding lanes are exactly 0 -> exp(0)=1 is harmless

    # reparametrize: z = eps * exp(0.5 * logvar) + mu   (eps padding lanes are 0)
    z = eps_ref[...] * jnp.exp(0.5 * lv_pad) + mu_pad              # (TB, 128) f32

    # decode: relu(z @ W2 + b2) -> sigmoid(. @ W3 + b3)
    h2 = jnp.dot(z.astype(jnp.bfloat16), w2_ref[...],
                 preferred_element_type=jnp.float32)
    h2 = jnp.maximum(h2 + b2_ref[...], 0.0)                        # (TB, 512) f32

    logits = jnp.dot(h2.astype(jnp.bfloat16), w3_ref[...],
                     preferred_element_type=jnp.float32) + b3_ref[...]
    recon_ref[...] = jax.nn.sigmoid(logits)                        # (TB, 896) f32


def init_params(key):
    """Deterministic parameter init (uniform, fan-in scaled, like nn.Linear)."""
    def linear(key, fan_in, fan_out):
        k_w, k_b = jax.random.split(key)
        bound = 1.0 / jnp.sqrt(fan_in)
        w = jax.random.uniform(k_w, (fan_in, fan_out), jnp.float32, -bound, bound)
        b = jax.random.uniform(k_b, (1, fan_out), jnp.float32, -bound, bound)
        return w, b

    ks = jax.random.split(key, 5)
    w1, b1 = linear(ks[0], D_IN, D_H)
    wmu, bmu = linear(ks[1], D_H, D_Z)
    wstd, bstd = linear(ks[2], D_H, D_Z)
    w2, b2 = linear(ks[3], D_Z, D_H)
    w3, b3 = linear(ks[4], D_H, D_IN)
    return (w1, b1, wmu, bmu, wstd, bstd, w2, b2, w3, b3)


def pack_params(params):
    """Pad feature dims to multiples of 128, fuse fc_mu/fc_std, cast weights to bf16.
    Done once; the kernel only ever sees the packed form."""
    w1, b1, wmu, bmu, wstd, bstd, w2, b2, w3, b3 = params
    bf = jnp.bfloat16
    w1_p = jnp.zeros((D_IN_P, D_H_P), bf).at[:D_IN, :D_H].set(w1.astype(bf))
    b1_p = jnp.zeros((1, D_H_P), jnp.float32).at[:, :D_H].set(b1)
    wms_p = (jnp.zeros((D_H_P, D_MS_P), bf)
             .at[:D_H, :D_Z].set(wmu.astype(bf))
             .at[:D_H, D_Z_P:D_Z_P + D_Z].set(wstd.astype(bf)))
    bms_p = (jnp.zeros((1, D_MS_P), jnp.float32)
             .at[:, :D_Z].set(bmu)
             .at[:, D_Z_P:D_Z_P + D_Z].set(bstd))
    w2_p = jnp.zeros((D_Z_P, D_H_P), bf).at[:D_Z, :D_H].set(w2.astype(bf))
    b2_p = jnp.zeros((1, D_H_P), jnp.float32).at[:, :D_H].set(b2)
    w3_p = jnp.zeros((D_H_P, D_IN_P), bf).at[:D_H, :D_IN].set(w3.astype(bf))
    b3_p = jnp.zeros((1, D_IN_P), jnp.float32).at[:, :D_IN].set(b3)
    return (w1_p, b1_p, wms_p, bms_p, w2_p, b2_p, w3_p, b3_p)


def vae_forward(x, eps, packed_params, *, batch_tile=256):
    """x: (B, 1, 28, 28) or (B, 784); eps: (B, 20). Returns (recon, mu, logvar).

    batch_tile=256 keeps double-buffered tiles + resident bf16 weights well
    under the scoped-VMEM default on every generation (including v7x's 64 MiB).
    """
    x_flat = x.reshape(-1, D_IN)
    B = x_flat.shape[0]

    batch_tile = _round_up(batch_tile, 8)
    tb = min(batch_tile, _round_up(B, 8))      # f32 sublane multiple
    b_pad = _round_up(B, tb)
    num_tiles = b_pad // tb

    # zero-pad batch and lane dims once in the wrapper; padded rows/lanes are
    # sliced off below so they never produce visible garbage.
    x_p = (jnp.zeros((b_pad, D_IN_P), jnp.bfloat16)
           .at[:B, :D_IN].set(x_flat.astype(jnp.bfloat16)))
    eps_p = (jnp.zeros((b_pad, D_Z_P), jnp.float32)
             .at[:B, :D_Z].set(eps.astype(jnp.float32)))

    def act_spec(cols):
        return pl.BlockSpec((tb, cols), lambda i: (i, 0))

    def resident_spec(shape):
        # constant block index -> fetched once per call, resident across tiles
        return pl.BlockSpec(shape, lambda i: (0, 0))

    w1_p, b1_p, wms_p, bms_p, w2_p, b2_p, w3_p, b3_p = packed_params

    grid_spec = pltpu.PrefetchScalarGridSpec(
        num_scalar_prefetch=0,
        grid=(num_tiles,),
        in_specs=[
            act_spec(D_IN_P),                 # x tile
            act_spec(D_Z_P),                  # eps tile
            resident_spec(w1_p.shape), resident_spec(b1_p.shape),
            resident_spec(wms_p.shape), resident_spec(bms_p.shape),
            resident_spec(w2_p.shape), resident_spec(b2_p.shape),
            resident_spec(w3_p.shape), resident_spec(b3_p.shape),
        ],
        out_specs=(act_spec(D_IN_P), act_spec(D_MS_P)),
    )

    recon_p, ms_p = pl.pallas_call(
        vae_kernel,
        grid_spec=grid_spec,
        out_shape=(
            jax.ShapeDtypeStruct((b_pad, D_IN_P), jnp.float32),
            jax.ShapeDtypeStruct((b_pad, D_MS_P), jnp.float32),
        ),
        compiler_params=pltpu.CompilerParams(
            dimension_semantics=("parallel",)),   # megacore sharding on v7x
    )(x_p, eps_p, *packed_params)

    recon = recon_p[:B, :D_IN]
    mu = ms_p[:B, :D_Z]
    logvar = ms_p[:B, D_Z_P:D_Z_P + D_Z]
    return recon, mu, logvar


if __name__ == "__main__":
    key = jax.random.PRNGKey(0)
    k_x, k_eps, k_params = jax.random.split(key, 3)

    B = 20
    x = jax.random.normal(k_x, (B, 1, 28, 28), dtype=jnp.float32)
    eps = jax.random.normal(k_eps, (B, D_Z), dtype=jnp.float32)

    raw = init_params(k_params)
    packed = pack_params(raw)

    # batch_tile=8 at this toy size -> 3 grid steps (exercises tiling + batch tail padding)
    fwd = jax.jit(functools.partial(vae_forward, batch_tile=8))
    recon, mu, logvar = fwd(x, eps, packed)
    jax.block_until_ready((recon, mu, logvar))

    assert recon.shape == (B, D_IN)
    assert mu.shape == (B, D_Z)
    assert logvar.shape == (B, D_Z)

    # pure-JAX reference using the same bf16-rounded weights (kernel feeds bf16 to the MXU)
    def q(w):
        return w.astype(jnp.bfloat16).astype(jnp.float32)

    w1, b1, wmu, bmu, wstd, bstd, w2, b2, w3, b3 = raw
    xf = x.reshape(-1, D_IN)
    h1 = jnp.maximum(xf @ q(w1) + b1, 0.0)
    mu_r = h1 @ q(wmu) + bmu
    lv_r = h1 @ q(wstd) + bstd
    z_r = eps * jnp.exp(0.5 * lv_r) + mu_r
    h2 = jnp.maximum(z_r @ q(w2) + b2, 0.0)
    recon_r = jax.nn.sigmoid(h2 @ q(w3) + b3)

    assert bool(jnp.all(jnp.isfinite(recon)))
    assert bool(jnp.all(jnp.isfinite(mu)))
    assert bool(jnp.all(jnp.isfinite(logvar)))
    assert jnp.allclose(mu, mu_r, atol=3e-2), float(jnp.max(jnp.abs(mu - mu_r)))
    assert jnp.allclose(logvar, lv_r, atol=3e-2), float(jnp.max(jnp.abs(logvar - lv_r)))
    assert jnp.allclose(recon, recon_r, atol=3e-2), float(jnp.max(jnp.abs(recon - recon_r)))

    print("KERNEL_OK")
</pallas_src>

<mosaic_0001>
module attributes {stable_mosaic.version = 11 : i64} {
  func.func @vae_kernel(%arg0: i32, %arg1: memref<8x896xbf16, #tpu.memory_space<vmem>>, %arg2: memref<8x128xf32, #tpu.memory_space<vmem>>, %arg3: memref<896x512xbf16, #tpu.memory_space<vmem>>, %arg4: memref<1x512xf32, #tpu.memory_space<vmem>>, %arg5: memref<512x256xbf16, #tpu.memory_space<vmem>>, %arg6: memref<1x256xf32, #tpu.memory_space<vmem>>, %arg7: memref<128x512xbf16, #tpu.memory_space<vmem>>, %arg8: memref<1x512xf32, #tpu.memory_space<vmem>>, %arg9: memref<512x896xbf16, #tpu.memory_space<vmem>>, %arg10: memref<1x896xf32, #tpu.memory_space<vmem>>, %arg11: memref<8x896xf32, #tpu.memory_space<vmem>>, %arg12: memref<8x256xf32, #tpu.memory_space<vmem>>) attributes {dimension_semantics = [#tpu.dimension_semantics<parallel>], iteration_bounds = array<i64: 3>, scalar_prefetch = 0 : i64, scratch_operands = 0 : i64, tpu.core_type = #tpu.core_type<tc>, window_params = [{transform_indices = @transform_0, window_bounds = array<i64: 8, 896>}, {transform_indices = @transform_1, window_bounds = array<i64: 8, 128>}, {pipeline_mode = #tpu.pipeline_mode<synchronous>, transform_indices = @transform_2, window_bounds = array<i64: 896, 512>}, {pipeline_mode = #tpu.pipeline_mode<synchronous>, transform_indices = @transform_3, window_bounds = array<i64: 1, 512>}, {pipeline_mode = #tpu.pipeline_mode<synchronous>, transform_indices = @transform_4, window_bounds = array<i64: 512, 256>}, {pipeline_mode = #tpu.pipeline_mode<synchronous>, transform_indices = @transform_5, window_bounds = array<i64: 1, 256>}, {pipeline_mode = #tpu.pipeline_mode<synchronous>, transform_indices = @transform_6, window_bounds = array<i64: 128, 512>}, {pipeline_mode = #tpu.pipeline_mode<synchronous>, transform_indices = @transform_7, window_bounds = array<i64: 1, 512>}, {pipeline_mode = #tpu.pipeline_mode<synchronous>, transform_indices = @transform_8, window_bounds = array<i64: 512, 896>}, {pipeline_mode = #tpu.pipeline_mode<synchronous>, transform_indices = @transform_9, window_bounds = array<i64: 1, 896>}, {transform_indices = @transform_10, window_bounds = array<i64: 8, 896>}, {transform_indices = @transform_11, window_bounds = array<i64: 8, 256>}]} {
    %c0 = arith.constant 0 : index
    %c0_0 = arith.constant 0 : index
    %0 = vector.load %arg1[%c0, %c0_0] : memref<8x896xbf16, #tpu.memory_space<vmem>>, vector<8x896xbf16>
    %c0_1 = arith.constant 0 : index
    %c0_2 = arith.constant 0 : index
    %1 = vector.load %arg3[%c0_1, %c0_2] : memref<896x512xbf16, #tpu.memory_space<vmem>>, vector<896x512xbf16>
    %cst = arith.constant dense<0.000000e+00> : vector<8x512xf32>
    %2 = tpu.matmul %0, %1, %cst {dimension_numbers = #tpu.dot_dimension_numbers<[1], [0], [0], [1], [0, 0, 1, 1], [], []>} : vector<8x896xbf16>, vector<896x512xbf16>, vector<8x512xf32> -> vector<8x512xf32>
    %c0_3 = arith.constant 0 : index
    %c0_4 = arith.constant 0 : index
    %3 = vector.load %arg4[%c0_3, %c0_4] : memref<1x512xf32, #tpu.memory_space<vmem>>, vector<1x512xf32>
    %4 = vector.broadcast %3 : vector<1x512xf32> to vector<8x512xf32>
    %5 = arith.addf %2, %4 : vector<8x512xf32>
    %cst_5 = arith.constant 0.000000e+00 : f32
    %6 = vector.broadcast %cst_5 : f32 to vector<8x512xf32>
    %7 = arith.maximumf %5, %6 : vector<8x512xf32>
    %8 = arith.truncf %7 : vector<8x512xf32> to vector<8x512xbf16>
    %c0_6 = arith.constant 0 : index
    %c0_7 = arith.constant 0 : index
    %9 = vector.load %arg5[%c0_6, %c0_7] : memref<512x256xbf16, #tpu.memory_space<vmem>>, vector<512x256xbf16>
    %cst_8 = arith.constant dense<0.000000e+00> : vector<8x256xf32>
    %10 = tpu.matmul %8, %9, %cst_8 {dimension_numbers = #tpu.dot_dimension_numbers<[1], [0], [0], [1], [0, 0, 1, 1], [], []>} : vector<8x512xbf16>, vector<512x256xbf16>, vector<8x256xf32> -> vector<8x256xf32>
    %c0_9 = arith.constant 0 : index
    %c0_10 = arith.constant 0 : index
    %11 = vector.load %arg6[%c0_9, %c0_10] : memref<1x256xf32, #tpu.memory_space<vmem>>, vector<1x256xf32>
    %12 = vector.broadcast %11 : vector<1x256xf32> to vector<8x256xf32>
    %13 = arith.addf %10, %12 : vector<8x256xf32>
    %c0_11 = arith.constant 0 : index
    %c0_12 = arith.constant 0 : index
    %14 = vector.load %arg12[%c0_11, %c0_12] : memref<8x256xf32, #tpu.memory_space<vmem>>, vector<8x256xf32>
    tpu.vector_store %arg12[%c0_11, %c0_12], %13 {strides = array<i32>} : memref<8x256xf32, #tpu.memory_space<vmem>>, vector<8x256xf32>,
    %15 = vector.extract_strided_slice %13 {offsets = [0, 0], sizes = [8, 128], strides = [1, 1]} : vector<8x256xf32> to vector<8x128xf32>
    %16 = vector.extract_strided_slice %13 {offsets = [0, 128], sizes = [8, 128], strides = [1, 1]} : vector<8x256xf32> to vector<8x128xf32>
    %c0_13 = arith.constant 0 : index
    %c0_14 = arith.constant 0 : index
    %17 = vector.load %arg2[%c0_13, %c0_14] : memref<8x128xf32, #tpu.memory_space<vmem>>, vector<8x128xf32>
    %cst_15 = arith.constant 5.000000e-01 : f32
    %18 = vector.broadcast %cst_15 : f32 to vector<8x128xf32>
    %19 = arith.mulf %18, %16 : vector<8x128xf32>
    %20 = math.exp %19 : vector<8x128xf32>
    %21 = arith.mulf %17, %20 : vector<8x128xf32>
    %22 = arith.addf %21, %15 : vector<8x128xf32>
    %23 = arith.truncf %22 : vector<8x128xf32> to vector<8x128xbf16>
    %c0_16 = arith.constant 0 : index
    %c0_17 = arith.constant 0 : index
    %24 = vector.load %arg7[%c0_16, %c0_17] : memref<128x512xbf16, #tpu.memory_space<vmem>>, vector<128x512xbf16>
    %cst_18 = arith.constant dense<0.000000e+00> : vector<8x512xf32>
    %25 = tpu.matmul %23, %24, %cst_18 {dimension_numbers = #tpu.dot_dimension_numbers<[1], [0], [0], [1], [0, 0, 1, 1], [], []>} : vector<8x128xbf16>, vector<128x512xbf16>, vector<8x512xf32> -> vector<8x512xf32>
    %c0_19 = arith.constant 0 : index
    %c0_20 = arith.constant 0 : index
    %26 = vector.load %arg8[%c0_19, %c0_20] : memref<1x512xf32, #tpu.memory_space<vmem>>, vector<1x512xf32>
    %27 = vector.broadcast %26 : vector<1x512xf32> to vector<8x512xf32>
    %28 = arith.addf %25, %27 : vector<8x512xf32>
    %cst_21 = arith.constant 0.000000e+00 : f32
    %29 = vector.broadcast %cst_21 : f32 to vector<8x512xf32>
    %30 = arith.maximumf %28, %29 : vector<8x512xf32>
    %31 = arith.truncf %30 : vector<8x512xf32> to vector<8x512xbf16>
    %c0_22 = arith.constant 0 : index
    %c0_23 = arith.constant 0 : index
    %32 = vector.load %arg9[%c0_22, %c0_23] : memref<512x896xbf16, #tpu.memory_space<vmem>>, vector<512x896xbf16>
    %cst_24 = arith.constant dense<0.000000e+00> : vector<8x896xf32>
    %33 = tpu.matmul %31, %32, %cst_24 {dimension_numbers = #tpu.dot_dimension_numbers<[1], [0], [0], [1], [0, 0, 1, 1], [], []>} : vector<8x512xbf16>, vector<512x896xbf16>, vector<8x896xf32> -> vector<8x896xf32>
    %c0_25 = arith.constant 0 : index
    %c0_26 = arith.constant 0 : index
    %34 = vector.load %arg10[%c0_25, %c0_26] : memref<1x896xf32, #tpu.memory_space<vmem>>, vector<1x896xf32>
    %35 = vector.broadcast %34 : vector<1x896xf32> to vector<8x896xf32>
    %36 = arith.addf %33, %35 : vector<8x896xf32>
    %37 = arith.negf %36 : vector<8x896xf32>
    %38 = math.exp %37 : vector<8x896xf32>
    %cst_27 = arith.constant 1.000000e+00 : f32
    %39 = vector.broadcast %cst_27 : f32 to vector<8x896xf32>
    %40 = arith.addf %39, %38 : vector<8x896xf32>
    %41 = arith.divf %39, %40 : vector<8x896xf32>
    %c0_28 = arith.constant 0 : index
    %c0_29 = arith.constant 0 : index
    %42 = vector.load %arg11[%c0_28, %c0_29] : memref<8x896xf32, #tpu.memory_space<vmem>>, vector<8x896xf32>
    tpu.vector_store %arg11[%c0_28, %c0_29], %41 {strides = array<i32>} : memref<8x896xf32, #tpu.memory_space<vmem>>, vector<8x896xf32>,
    return
  }
  func.func @transform_0(%arg0: i32) -> (i32, i32) {
    %c0_i32 = arith.constant 0 : i32
    %c0_i32_0 = arith.constant 0 : i32
    return %arg0, %c0_i32 : i32, i32
  }
  func.func @transform_1(%arg0: i32) -> (i32, i32) {
    %c0_i32 = arith.constant 0 : i32
    %c0_i32_0 = arith.constant 0 : i32
    return %arg0, %c0_i32 : i32, i32
  }
  func.func @transform_2(%arg0: i32) -> (i32, i32) {
    %c0_i32 = arith.constant 0 : i32
    %c0_i32_0 = arith.constant 0 : i32
    %c0_i32_1 = arith.constant 0 : i32
    return %c0_i32, %c0_i32_0 : i32, i32
  }
  func.func @transform_3(%arg0: i32) -> (i32, i32) {
    %c0_i32 = arith.constant 0 : i32
    %c0_i32_0 = arith.constant 0 : i32
    %c0_i32_1 = arith.constant 0 : i32
    return %c0_i32, %c0_i32_0 : i32, i32
  }
  func.func @transform_4(%arg0: i32) -> (i32, i32) {
    %c0_i32 = arith.constant 0 : i32
    %c0_i32_0 = arith.constant 0 : i32
    %c0_i32_1 = arith.constant 0 : i32
    return %c0_i32, %c0_i32_0 : i32, i32
  }
  func.func @transform_5(%arg0: i32) -> (i32, i32) {
    %c0_i32 = arith.constant 0 : i32
    %c0_i32_0 = arith.constant 0 : i32
    %c0_i32_1 = arith.constant 0 : i32
    return %c0_i32, %c0_i32_0 : i32, i32
  }
  func.func @transform_6(%arg0: i32) -> (i32, i32) {
    %c0_i32 = arith.constant 0 : i32
    %c0_i32_0 = arith.constant 0 : i32
    %c0_i32_1 = arith.constant 0 : i32
    return %c0_i32, %c0_i32_0 : i32, i32
  }
  func.func @transform_7(%arg0: i32) -> (i32, i32) {
    %c0_i32 = arith.constant 0 : i32
    %c0_i32_0 = arith.constant 0 : i32
    %c0_i32_1 = arith.constant 0 : i32
    return %c0_i32, %c0_i32_0 : i32, i32
  }
  func.func @transform_8(%arg0: i32) -> (i32, i32) {
    %c0_i32 = arith.constant 0 : i32
    %c0_i32_0 = arith.constant 0 : i32
    %c0_i32_1 = arith.constant 0 : i32
    return %c0_i32, %c0_i32_0 : i32, i32
  }
  func.func @transform_9(%arg0: i32) -> (i32, i32) {
    %c0_i32 = arith.constant 0 : i32
    %c0_i32_0 = arith.constant 0 : i32
    %c0_i32_1 = arith.constant 0 : i32
    return %c0_i32, %c0_i32_0 : i32, i32
  }
  func.func @transform_10(%arg0: i32) -> (i32, i32) {
    %c0_i32 = arith.constant 0 : i32
    %c0_i32_0 = arith.constant 0 : i32
    return %arg0, %c0_i32 : i32, i32
  }
  func.func @transform_11(%arg0: i32) -> (i32, i32) {
    %c0_i32 = arith.constant 0 : i32
    %c0_i32_0 = arith.constant 0 : i32
    return %arg0, %c0_i32 : i32, i32
  }
}

</mosaic_0001>

<bundles_post_ra>
// kernel: vae_forward.1
= control target key start
LH: loop header
LB: loop body
LE: loop exit
PB: predicated region body
PF: predicated region fallthrough
CT: control target
= control target key end

     0   :  { %17 = vsyncpa [#allocation3], 0  ;;  %s7301_s0 = inlined_call_operand.vmem [shape: bf16[24,896], index: 0, kind: input, shape index: {}]   ;;  %s7302_s1 = inlined_call_operand.vmem [shape: f32[24,128], index: 1, kind: input, shape index: {}]   ;;  %s7303_s2 = inlined_call_operand.hbm [shape: bf16[896,512], index: 2, kind: input, shape index: {}]   ;;  %s7304_s3 = inlined_call_operand.vmem [shape: f32[1,512], index: 3, kind: input, shape index: {}]   ;;  %s7305_s4 = inlined_call_operand.vmem [shape: bf16[512,256], index: 4, kind: input, shape index: {}]   ;;  %s7306_s5 = inlined_call_operand.vmem [shape: f32[1,256], index: 5, kind: input, shape index: {}]   ;;  %s7307_s6 = inlined_call_operand.vmem [shape: bf16[128,512], index: 6, kind: input, shape index: {}]   ;;  %s7308_s7 = inlined_call_operand.vmem [shape: f32[1,512], index: 7, kind: input, shape index: {}]   ;;  %s7309_s8 = inlined_call_operand.hbm [shape: bf16[512,896], index: 8, kind: input, shape index: {}]   ;;  %s7310_s9 = inlined_call_operand.vmem [shape: f32[1,896], index: 9, kind: input, shape index: {}]   ;;  %s7311_s10 = inlined_call_operand.hbm [shape: f32[24,896], index: 10, kind: output, shape index: {0}]   ;;  %s7312_s11 = inlined_call_operand.vmem [shape: f32[24,256], index: 11, kind: output, shape index: {1}]  }
   0x1   :  { %18 = vsyncpa [#allocation6], 0 }
   0x2   :  { %19 = vsyncpa [#allocation4], 0 }
   0x3   :  { %21 = vsyncpa [#allocation4 + $0x1], 0  ;;  %s6700_s17 = smov 0   ;;  %s6702_s18 = smov 0  }
   0x4   :  { %s6704_s19 = smov 0   ;;  %s6706_s20 = smov 0  }
   0x5 LB: > { %7321 = sst [smem:[#allocation11_spill]] %s6618_s17  ;;  %s6721_s21 = sadd.s32 4294967295, %s6630_s20   ;;  %s6630_s20 = sphi %s6706_s20, %s7339_s20   ;;  %s6626_s19 = sphi %s6704_s19, %s7341_s19   ;;  %s6622_s18 = sphi %s6702_s18, %s7343_s18   ;;  %s6618_s17 = sphi %s6700_s17, %s7342_s17  }
   0x6   : > { %7322 = sst [smem:[#allocation12_spill]] %s6626_s19  ;;  %s4929_s22 = sadd.s32 4294967294, %s6630_s20  }
   0x7   : > { %s6725_s23 = sadd.s32 1, %s6630_s20   ;;  %s254_s24 = sadd.s32 1, %s6626_s19 }
   0x8   : > { %7323 = sst [smem:[#allocation13_spill]] %s6725_s23  ;;  %s251_s25 = ssub.s32 %s6630_s20, %s6725_s23 }
   0x9   : > { %p264_p0 = scmp.ne.s32.totalorder %s6626_s19, %s6622_s18  ;;  %p252_p1 = scmp.eq.s32.totalorder %s251_s25, 0 }
   0xa   : > { %p265_p2 = scmp.eq.s32.totalorder %s6721_s21, 2  ;;  %p270_p3 = scmp.ne.s32.totalorder %s6622_s18, %s6618_s17 }
   0xb   : > { %p271_p4 = scmp.eq.s32.totalorder %s4929_s22, 2  ;;  %p4930_p7 = scmp.ge.s32.totalorder %s6630_s20, 1 }
   0xc   : > { %s6736_s26 = scalar_select %p252_p1, %s6626_s19, %s254_s24  }
   0xd   : > { %p6738_p5 = por %p265_p2, %p264_p0  ;;  %p6742_p6 = por %p271_p4, %p270_p3 }
   0xe   : > { %7324 = sst [smem:[#allocation14_spill]] %s6736_s26  ;;  %p304_p8 = scmp.lt.s32.totalorder %s6630_s20, 4 }
   0xf   : > { %s7325_s27 = scalar_select %p6738_p5, 1, 0 }
  0x10   : > { %s7326_s28 = scalar_select %p6742_p6, 1, 0 }
  0x11   : > { %p7314_p9 = scmp.eq.s32.totalorder %s6721_s21, 0  ;;  %p6749_p10 = pnand %p4930_p7, %p304_p8 }
  0x12   : > { %7327 = sst [smem:[#allocation15_spill]] %s7326_s28  ;;  %s6632_s30 = smov [#allocation2]  }
  0x13   : > { %s7328_s29 = scalar_select %p6749_p10, 1, 0 }
  0x14   : > { %s316_s12 = sshll.u32 %s6632_s30, 4  ;;  %p5612_p11 = pneg %p6749_p10  ;;  %s317_s12 = int_to_ptr.vmem [resolvable:$true] %s316_s12 }
  0x15   : > { %s6633_s14 = smov [#allocation5]   ;;  %s6504_s24 = scalar_lea.hbm %s7303_s2, 28672 }
  0x16   : > { %p6757_p12 = pnand %p7314_p9, %p5612_p11  ;;  %s344_s15 = sshll.u32 %s6633_s14, 4  ;;  %s6761_s15 = int_to_ptr.vmem [resolvable:$true] %s344_s15 }
  0x17   : > { %p6505_p13 = scmp.ne.s32.totalorder %s7303_s2, %s6504_s24  ;;  %p6511_p3 = scmp.lt.u32.totalorder %s6504_s24, %s7303_s2 }
  0x18   : > { %p6506_p0 = pneg %p6757_p12 }
  0x1a   : > { %p6507_p1 = pnand %p6506_p0, %p6505_p13 }
  0x1c   : > { %p6508_p2 = pneg %p6507_p1 }
  0x1e   : > { %p6513_p4 = pnand %p6511_p3, %p6508_p2 }
  0x20   : > { %6516 = shalt.err (!%p6513_p4)
}
  0x21   : > { %s6517_s14 = scalar_lea.vmem %s317_s12, 28672  ;;  %p6525_p9 = scmp.lt.s32.totalorder %s317_s12, %s317_s12 }
  0x22   : > { %p6518_p7 = scmp.ne.s32.totalorder %s317_s12, %s6517_s14  ;;  %p6526_p6 = scmp.lt.s32.totalorder %s6517_s14, %s6517_s14 }
  0x24   : > { %p6520_p8 = pnand %p6518_p7, %p6506_p0  ;;  %p6527_p5 = por %p6526_p6, %p6525_p9 }
  0x26   : > { %p6521_p11 = pneg %p6520_p8 }
  0x28   : > { %p6528_p10 = pnand %p6527_p5, %p6521_p11 }
  0x2a   : > { %6531 = shalt.err (!%p6528_p10)
}
  0x2b   : > { %s6634_s16 = smov 256   ;;  %s6635_s22 = smov 16  }
  0x2c   : > { %5615 = dma.hbm_to_vmem [thread:$0]  (!%p6757_p12), %s7303_s2, 28672, %s317_s12, [#allocation3], %s6634_s16, %s6634_s16, %s6635_s22  }
  0x2d   : > { %s6532_s30 = scalar_lea.hbm %s7309_s8, 28672 }
  0x2e   : > { %p6533_p13 = scmp.ne.s32.totalorder %s7309_s8, %s6532_s30  ;;  %p6539_p9 = scmp.lt.u32.totalorder %s6532_s30, %s7309_s8 }
  0x30   : > { %p6535_p5 = pnand %p6533_p13, %p6506_p0 }
  0x32   : > { %p6536_p6 = pneg %p6535_p5 }
  0x34   : > { %p6541_p10 = pnand %p6539_p9, %p6536_p6 }
  0x36   : > { %6544 = shalt.err (!%p6541_p10)
}
  0x37   : > { %s6545_s12 = scalar_lea.vmem %s6761_s15, 28672  ;;  %p6553_p4 = scmp.lt.s32.totalorder %s6761_s15, %s6761_s15 }
  0x38   : > { %p6546_p1 = scmp.ne.s32.totalorder %s6761_s15, %s6545_s12  ;;  %p6554_p7 = scmp.lt.s32.totalorder %s6545_s12, %s6545_s12 }
  0x3a   : > { %p6548_p2 = pnand %p6546_p1, %p6506_p0  ;;  %p6555_p8 = por %p6554_p7, %p6553_p4 }
  0x3c   : > { %p6549_p3 = pneg %p6548_p2 }
  0x3e   : > { %p6556_p11 = pnand %p6555_p8, %p6549_p3 }
  0x40   : > { %6559 = shalt.err (!%p6556_p11)
}
  0x41   : > { %s6636_s17 = smov 448   ;;  %s6637_s23 = smov 28  }
  0x42   : > { %5618 = dma.hbm_to_vmem [thread:$0]  (!%p6757_p12), %s7309_s8, 28672, %s6761_s15, [#allocation6], %s6636_s17, %s6636_s17, %s6637_s23  }
  0x43   : > { %p7330_p13 = scmp.ne.s32.totalorder %s7328_s29, 0 }
  0x44   : > { %p7331_p0 = scmp.eq.s32.totalorder (!%p7330_p13), %s6721_s21, 0 }
  0x45   : > { %378 = sbr.rel (%p7330_p13) target bundleno = 1492 (0x5d4), region = 60 }
  0x4c   : > { %6605 = dma.done.wait (%p7331_p0), [#allocation3], 28672   ;;  %p7332_p5 = pmov %p7331_p0 }
  0x4d   : > { %p7333_p6 = pmov %p7331_p0 }
  0x4e   : > { %6607 = vsyncadd (%p7332_p5), [#allocation3], 4294938624 }
  0x4f   : > { %6609 = dma.done.wait (%p7333_p6), [#allocation6], 28672   ;;  %p7334_p9 = pmov %p7331_p0 }
  0x50   : > { %v5667_v0 = vld [vmem:[#allocation2 + $0x4] ss:$16 sps:$4 sm:$0xff]   ;;  %v5669_v1 = vld [vmem:[#allocation2 + $0xc] ss:$16 sps:$4 sm:$0xff]   ;;  %v5671_v2 = vld [vmem:[#allocation2] ss:$16 sps:$4 sm:$0xff]  }
  0x51   : > { %6611 = vsyncadd (%p7334_p9), [#allocation6], 4294938624  ;;  %1841 = vmatprep.subr.bf16.mxu0 %v5667_v0  ;;  %v5672_v3 = vld [vmem:[#allocation2 + $0x8] ss:$16 sps:$4 sm:$0xff]   ;;  %2005 = vmatprep.subr.bf16.mxu1 %v5669_v1  ;;  %v5673_v4 = vld [vmem:[#allocation2 + $0x24] ss:$16 sps:$4 sm:$0xff]  }
  0x52   : > { %1842 = vmatpush1.bf16.msra.mxu0 %v5671_v2  ;;  %2006 = vmatpush1.bf16.msra.mxu1 %v5672_v3  ;;  %v5675_v5 = vld [vmem:[#allocation2 + $0x2c] ss:$16 sps:$4 sm:$0xff]   ;;  %v5677_v6 = vld [vmem:[#allocation2 + $0x20] ss:$16 sps:$4 sm:$0xff]   ;;  %v5678_v7 = vld [vmem:[#allocation2 + $0x28] ss:$16 sps:$4 sm:$0xff]  }
  0x53   : > { %1843 = vmatprep.subr.bf16.mxu0 %v5673_v4  ;;  %2007 = vmatprep.subr.bf16.mxu1 %v5675_v5  ;;  %v5679_v8 = vld [vmem:[#allocation2 + $0x44] ss:$16 sps:$4 sm:$0xff]   ;;  %v5681_v9 = vld [vmem:[#allocation2 + $0x4c] ss:$16 sps:$4 sm:$0xff]   ;;  %v5683_v10 = vld [vmem:[#allocation2 + $0x40] ss:$16 sps:$4 sm:$0xff]  }
  0x54   : > { %v5684_v11 = vld [vmem:[#allocation2 + $0x48] ss:$16 sps:$4 sm:$0xff]   ;;  %v5685_v12 = vld [vmem:[#allocation2 + $0x64] ss:$16 sps:$4 sm:$0xff]   ;;  %v5687_v13 = vld [vmem:[#allocation2 + $0x6c] ss:$16 sps:$4 sm:$0xff]  }
  0x55   : > { %v5689_v14 = vld [vmem:[#allocation2 + $0x60] ss:$16 sps:$4 sm:$0xff]   ;;  %v5690_v15 = vld [vmem:[#allocation2 + $0x68] ss:$16 sps:$4 sm:$0xff]   ;;  %v5691_v16 = vld [vmem:[#allocation2 + $0x84] ss:$16 sps:$4 sm:$0xff]  }
  0x56   : > { %1844 = vmatpush1.bf16.msra.mxu0 %v5677_v6  ;;  %2008 = vmatpush1.bf16.msra.mxu1 %v5678_v7  ;;  %v5693_v17 = vld [vmem:[#allocation2 + $0x8c] ss:$16 sps:$4 sm:$0xff]   ;;  %v5695_v18 = vld [vmem:[#allocation2 + $0x80] ss:$16 sps:$4 sm:$0xff]   ;;  %v5696_v19 = vld [vmem:[#allocation2 + $0x88] ss:$16 sps:$4 sm:$0xff]  }
  0x57   : > { %1845 = vmatprep.subr.bf16.mxu0 %v5679_v8  ;;  %2009 = vmatprep.subr.bf16.mxu1 %v5681_v9  ;;  %v5697_v20 = vld [vmem:[#allocation2 + $0xa4] ss:$16 sps:$4 sm:$0xff]   ;;  %v5699_v21 = vld [vmem:[#allocation2 + $0xac] ss:$16 sps:$4 sm:$0xff]   ;;  %v5701_v22 = vld [vmem:[#allocation2 + $0xa0] ss:$16 sps:$4 sm:$0xff]  }
  0x58   : > { %v5702_v23 = vld [vmem:[#allocation2 + $0xa8] ss:$16 sps:$4 sm:$0xff]   ;;  %v5703_v24 = vld [vmem:[#allocation2 + $0xc4] ss:$16 sps:$4 sm:$0xff]   ;;  %v5705_v25 = vld [vmem:[#allocation2 + $0xcc] ss:$16 sps:$4 sm:$0xff]  }
  0x59   : > { %v5707_v26 = vld [vmem:[#allocation2 + $0xc0] ss:$16 sps:$4 sm:$0xff]   ;;  %v5708_v27 = vld [vmem:[#allocation2 + $0xc8] ss:$16 sps:$4 sm:$0xff]   ;;  %v5709_v28 = vld [vmem:[#allocation2 + $0xe4] ss:$16 sps:$4 sm:$0xff]  }
  0x5a   : > { %1846 = vmatpush1.bf16.msra.mxu0 %v5683_v10  ;;  %2010 = vmatpush1.bf16.msra.mxu1 %v5684_v11  ;;  %v5711_v29 = vld [vmem:[#allocation2 + $0xec] ss:$16 sps:$4 sm:$0xff]   ;;  %v5713_v30 = vld [vmem:[#allocation2 + $0xe0] ss:$16 sps:$4 sm:$0xff]   ;;  %p431_p12 = scmp.lt.s32.totalorder %s6721_s21, 2  ;;  %p7335_p1 = scmp.ne.s32.totalorder %s7325_s27, 0 }
  0x5b   : > { %1847 = vmatprep.subr.bf16.mxu0 %v5685_v12  ;;  %2011 = vmatprep.subr.bf16.mxu1 %v5687_v13  ;;  %v5714_v31 = vld [vmem:[#allocation2 + $0xe8] ss:$16 sps:$4 sm:$0xff]   ;;  %v5715_v32 = vld [vmem:[#allocation2 + $0x104] ss:$16 sps:$4 sm:$0xff]   ;;  %v5717_v33 = vld [vmem:[#allocation2 + $0x10c] ss:$16 sps:$4 sm:$0xff]  }
  0x5c   : > { %v5719_v34 = vld [vmem:[#allocation2 + $0x100] ss:$16 sps:$4 sm:$0xff]   ;;  %v5720_v35 = vld [vmem:[#allocation2 + $0x108] ss:$16 sps:$4 sm:$0xff]   ;;  %s6822_s29 = scalar_select %p431_p12, %s6721_s21, 2 }
  0x5d   : > { %v5721_v36 = vld [vmem:[#allocation2 + $0x124] ss:$16 sps:$4 sm:$0xff]   ;;  %v5723_v37 = vld [vmem:[#allocation2 + $0x12c] ss:$16 sps:$4 sm:$0xff]   ;;  %v5725_v38 = vld [vmem:[#allocation2 + $0x120] ss:$16 sps:$4 sm:$0xff]  }
  0x5e   : > { %1848 = vmatpush1.bf16.msra.mxu0 %v5689_v14  ;;  %2012 = vmatpush1.bf16.msra.mxu1 %v5690_v15  ;;  %s5600_s13 = smul.u32 28, %s6822_s29  ;;  %v5726_v39 = vld [vmem:[#allocation2 + $0x128] ss:$16 sps:$4 sm:$0xff]   ;;  %v5727_v40 = vld [vmem:[#allocation2 + $0x144] ss:$16 sps:$4 sm:$0xff]   ;;  %s5502_s22 = sshll.u32 %s6822_s29, 4 }
  0x5f   : > { %1849 = vmatprep.subr.bf16.mxu0 %v5691_v16  ;;  %2013 = vmatprep.subr.bf16.mxu1 %v5693_v17  ;;  %v5729_v41 = vld [vmem:[#allocation2 + $0x14c] ss:$16 sps:$4 sm:$0xff]   ;;  %v5731_v42 = vld [vmem:[#allocation2 + $0x140] ss:$16 sps:$4 sm:$0xff]   ;;  %v5732_v43 = vld [vmem:[#allocation2 + $0x148] ss:$16 sps:$4 sm:$0xff]   ;;  %s444_s24 = scalar_lea.vmem %s7312_s11, %s5502_s22 }
  0x60   : > { %s6828_s19 = scalar_lea.vmem %s7301_s0, %s5600_s13  ;;  %v5733_v44 = vld [vmem:[#allocation2 + $0x164] ss:$16 sps:$4 sm:$0xff]   ;;  %v5735_v45 = vld [vmem:[#allocation2 + $0x16c] ss:$16 sps:$4 sm:$0xff]   ;;  %v5737_v47 = vld [vmem:[#allocation2 + $0x160] ss:$16 sps:$4 sm:$0xff]  }
  0x61   : > { %v446_v46 = vld [vmem:[%s6828_s19] sm:$0xff]  ;;  %v5738_v49 = vld [vmem:[#allocation2 + $0x168] ss:$16 sps:$4 sm:$0xff]   ;;  %v5741_v51 = vld [vmem:[#allocation2 + $0x18c] ss:$16 sps:$4 sm:$0xff]   ;;  %s4938_s25 = sshll.u32 %s6822_s29, 3 }
  0x62   : > { %1850 = vmatpush1.bf16.msra.mxu0 %v5695_v18  ;;  %2014 = vmatpush1.bf16.msra.mxu1 %v5696_v19  ;;  %v4942_v48 = vcombine.high %v446_v46, %v446_v46  ;;  %v5739_v50 = vld [vmem:[#allocation2 + $0x184] ss:$16 sps:$4 sm:$0xff]   ;;  %v5743_v52 = vld [vmem:[#allocation2 + $0x180] ss:$16 sps:$4 sm:$0xff]   ;;  %v5744_v53 = vld [vmem:[#allocation2 + $0x188] ss:$16 sps:$4 sm:$0xff]   ;;  %v4941_v4 = vcombine.low %v446_v46, %v446_v46  ;;  %s439_s12 = scalar_lea.vmem %s7302_s1, %s4938_s25 }
  0x63   : > { %1851 = vmatprep.subr.bf16.mxu0 %v5697_v20  ;;  %2015 = vmatprep.subr.bf16.mxu1 %v5699_v21  ;;  %v5745_v54 = vld [vmem:[#allocation2 + $0x1a4] ss:$16 sps:$4 sm:$0xff]   ;;  %v5747_v55 = vld [vmem:[#allocation2 + $0x1ac] ss:$16 sps:$4 sm:$0xff]   ;;  %v5749_v56 = vld [vmem:[#allocation2 + $0x1a0] ss:$16 sps:$4 sm:$0xff]  }
  0x64   : > { %1873 = vmatprep.mubr.bf16.mxu0 %v4942_v48  ;;  %2037 = vmatprep.mubr.bf16.mxu1 %v4942_v48  ;;  %v5750_v57 = vld [vmem:[#allocation2 + $0x1a8] ss:$16 sps:$4 sm:$0xff]   ;;  %v5751_v58 = vld [vmem:[#allocation2 + $0x1c4] ss:$16 sps:$4 sm:$0xff]   ;;  %v5753_v59 = vld [vmem:[#allocation2 + $0x1cc] ss:$16 sps:$4 sm:$0xff]  }
  0x65   : > { %v5755_v60 = vld [vmem:[#allocation2 + $0x1c0] ss:$16 sps:$4 sm:$0xff]   ;;  %v5756_v61 = vld [vmem:[#allocation2 + $0x1c8] ss:$16 sps:$4 sm:$0xff]   ;;  %v5757_v62 = vld [vmem:[#allocation2 + $0x1e4] ss:$16 sps:$4 sm:$0xff]  }
  0x66   : > { %1852 = vmatpush1.bf16.msra.mxu0 %v5701_v22  ;;  %2016 = vmatpush1.bf16.msra.mxu1 %v5702_v23  ;;  %v5759_v63 = vld [vmem:[#allocation2 + $0x1ec] ss:$16 sps:$4 sm:$0xff]   ;;  %v5761_v0 = vld [vmem:[#allocation2 + $0x1e0] ss:$16 sps:$4 sm:$0xff]   ;;  %v5762_v1 = vld [vmem:[#allocation2 + $0x1e8] ss:$16 sps:$4 sm:$0xff]  }
  0x67   : > { %1853 = vmatprep.subr.bf16.mxu0 %v5703_v24  ;;  %2017 = vmatprep.subr.bf16.mxu1 %v5705_v25  ;;  %v5767_v2 = vld [vmem:[#allocation2 + $0x204] ss:$16 sps:$4 sm:$0xff]   ;;  %v5770_v3 = vld [vmem:[#allocation2 + $0x20c] ss:$16 sps:$4 sm:$0xff]   ;;  %v5765_v5 = vld [vmem:[#allocation2 + $0x200] ss:$16 sps:$4 sm:$0xff]  }
  0x68   : > { %v5768_v6 = vld [vmem:[#allocation2 + $0x208] ss:$16 sps:$4 sm:$0xff]   ;;  %v5773_v7 = vld [vmem:[#allocation2 + $0x224] ss:$16 sps:$4 sm:$0xff]   ;;  %v5776_v8 = vld [vmem:[#allocation2 + $0x22c] ss:$16 sps:$4 sm:$0xff]  }
  0x69   : > { %v5771_v9 = vld [vmem:[#allocation2 + $0x220] ss:$16 sps:$4 sm:$0xff]   ;;  %v5774_v10 = vld [vmem:[#allocation2 + $0x228] ss:$16 sps:$4 sm:$0xff]   ;;  %v5779_v11 = vld [vmem:[#allocation2 + $0x244] ss:$16 sps:$4 sm:$0xff]  }
  0x6a   : > { %1854 = vmatpush1.bf16.msra.mxu0 %v5707_v26  ;;  %2018 = vmatpush1.bf16.msra.mxu1 %v5708_v27  ;;  %v5782_v12 = vld [vmem:[#allocation2 + $0x24c] ss:$16 sps:$4 sm:$0xff]   ;;  %v5777_v13 = vld [vmem:[#allocation2 + $0x240] ss:$16 sps:$4 sm:$0xff]   ;;  %v5780_v14 = vld [vmem:[#allocation2 + $0x248] ss:$16 sps:$4 sm:$0xff]  }
  0x6b   : > { %1855 = vmatprep.subr.bf16.mxu0 %v5709_v28  ;;  %2019 = vmatprep.subr.bf16.mxu1 %v5711_v29  ;;  %v5785_v15 = vld [vmem:[#allocation2 + $0x264] ss:$16 sps:$4 sm:$0xff]   ;;  %v5788_v16 = vld [vmem:[#allocation2 + $0x26c] ss:$16 sps:$4 sm:$0xff]   ;;  %v5783_v17 = vld [vmem:[#allocation2 + $0x260] ss:$16 sps:$4 sm:$0xff]  }
  0x6c   : > { %v5786_v18 = vld [vmem:[#allocation2 + $0x268] ss:$16 sps:$4 sm:$0xff]   ;;  %v5791_v19 = vld [vmem:[#allocation2 + $0x284] ss:$16 sps:$4 sm:$0xff]   ;;  %v5794_v20 = vld [vmem:[#allocation2 + $0x28c] ss:$16 sps:$4 sm:$0xff]  }
  0x6d   : > { %v5789_v21 = vld [vmem:[#allocation2 + $0x280] ss:$16 sps:$4 sm:$0xff]   ;;  %v5792_v22 = vld [vmem:[#allocation2 + $0x288] ss:$16 sps:$4 sm:$0xff]   ;;  %v5797_v23 = vld [vmem:[#allocation2 + $0x2a4] ss:$16 sps:$4 sm:$0xff]  }
  0x6e   : > { %1856 = vmatpush1.bf16.msra.mxu0 %v5713_v30  ;;  %2020 = vmatpush1.bf16.msra.mxu1 %v5714_v31  ;;  %v5800_v24 = vld [vmem:[#allocation2 + $0x2ac] ss:$16 sps:$4 sm:$0xff]   ;;  %v5795_v25 = vld [vmem:[#allocation2 + $0x2a0] ss:$16 sps:$4 sm:$0xff]   ;;  %v5798_v26 = vld [vmem:[#allocation2 + $0x2a8] ss:$16 sps:$4 sm:$0xff]  }
  0x6f   : > { %1857 = vmatprep.subr.bf16.mxu0 %v5715_v32  ;;  %2021 = vmatprep.subr.bf16.mxu1 %v5717_v33  ;;  %v5803_v27 = vld [vmem:[#allocation2 + $0x2c4] ss:$16 sps:$4 sm:$0xff]   ;;  %v5806_v28 = vld [vmem:[#allocation2 + $0x2cc] ss:$16 sps:$4 sm:$0xff]   ;;  %v5801_v31 = vld [vmem:[#allocation2 + $0x2c0] ss:$16 sps:$4 sm:$0xff]  }
  0x70   : > { %v6832_v29 = vld [vmem:[%s6828_s19 + $0x8] sm:$0xff]  ;;  %v5809_v33 = vld [vmem:[#allocation2 + $0x2e4] ss:$16 sps:$4 sm:$0xff]   ;;  %s421_s29 = sand.u32 1, %s6622_s18   ;;  %s5601_s22 = smul.u32 896, %s6721_s21 }
  0x71   : > { %v4944_v30 = vcombine.high %v6832_v29, %v6832_v29  ;;  %v5804_v32 = vld [vmem:[#allocation2 + $0x2c8] ss:$16 sps:$4 sm:$0xff]   ;;  %v5830_v46 = vld [vmem:[#allocation2 + $0x34c] ss:$16 sps:$4 sm:$0xff]   ;;  %s5599_s13 = smul.u32 56, %s421_s29  ;;  %s4789_s30 = scalar_lea.sflag [#allocation4], %s421_s29 }
  0x72   : > { %1858 = vmatpush1.bf16.msra.mxu0 %v5719_v34  ;;  %2022 = vmatpush1.bf16.msra.mxu1 %v5720_v35  ;;  %v5812_v34 = vld [vmem:[#allocation2 + $0x2ec] ss:$16 sps:$4 sm:$0xff]   ;;  %v5807_v35 = vld [vmem:[#allocation2 + $0x2e0] ss:$16 sps:$4 sm:$0xff]   ;;  %v5828_v48 = vld [vmem:[#allocation2 + $0x348] ss:$16 sps:$4 sm:$0xff]   ;;  %s7255_s25 = scalar_lea.hbm %s7311_s10, %s5601_s22 }
  0x73   : > { %1859 = vmatprep.subr.bf16.mxu0 %v5721_v36  ;;  %2023 = vmatprep.subr.bf16.mxu1 %v5723_v37  ;;  %v5810_v36 = vld [vmem:[#allocation2 + $0x2e8] ss:$16 sps:$4 sm:$0xff]   ;;  %v5815_v37 = vld [vmem:[#allocation2 + $0x304] ss:$16 sps:$4 sm:$0xff]   ;;  %s7237_s15 = scalar_lea.vmem [#allocation7], %s5599_s13  ;;  %s6639_s21 = smov [#allocation7]  }
  0x76   : > { %1860 = vmatpush1.bf16.msra.mxu0 %v5725_v38  ;;  %2024 = vmatpush1.bf16.msra.mxu1 %v5726_v39  ;;  %v5818_v38 = vld [vmem:[#allocation2 + $0x30c] ss:$16 sps:$4 sm:$0xff]   ;;  %v5813_v39 = vld [vmem:[#allocation2 + $0x300] ss:$16 sps:$4 sm:$0xff]  }
  0x77   : > { %1861 = vmatprep.subr.bf16.mxu0 %v5727_v40  ;;  %2025 = vmatprep.subr.bf16.mxu1 %v5729_v41  ;;  %v5816_v40 = vld [vmem:[#allocation2 + $0x308] ss:$16 sps:$4 sm:$0xff]   ;;  %v5821_v41 = vld [vmem:[#allocation2 + $0x324] ss:$16 sps:$4 sm:$0xff]  }
  0x7a   : > { %1862 = vmatpush1.bf16.msra.mxu0 %v5731_v42  ;;  %2026 = vmatpush1.bf16.msra.mxu1 %v5732_v43  ;;  %v5824_v42 = vld [vmem:[#allocation2 + $0x32c] ss:$16 sps:$4 sm:$0xff]   ;;  %v5819_v43 = vld [vmem:[#allocation2 + $0x320] ss:$16 sps:$4 sm:$0xff]  }
  0x7b   : > { %1863 = vmatprep.subr.bf16.mxu0 %v5733_v44  ;;  %2027 = vmatprep.subr.bf16.mxu1 %v5735_v45  ;;  %v5822_v44 = vld [vmem:[#allocation2 + $0x328] ss:$16 sps:$4 sm:$0xff]   ;;  %v5827_v45 = vld [vmem:[#allocation2 + $0x344] ss:$16 sps:$4 sm:$0xff]  }
  0x7e   : > { %1864 = vmatpush1.bf16.msra.mxu0 %v5737_v47  ;;  %2028 = vmatpush1.bf16.msra.mxu1 %v5738_v49  ;;  %v5825_v47 = vld [vmem:[#allocation2 + $0x340] ss:$16 sps:$4 sm:$0xff]   ;;  %v5833_v49 = vld [vmem:[#allocation2 + $0x364] ss:$16 sps:$4 sm:$0xff]  }
  0x7f   : > { %1865 = vmatprep.subr.bf16.mxu0 %v5739_v50  ;;  %2029 = vmatprep.subr.bf16.mxu1 %v5741_v51  ;;  %v5836_v50 = vld [vmem:[#allocation2 + $0x36c] ss:$16 sps:$4 sm:$0xff]   ;;  %v5831_v51 = vld [vmem:[#allocation2 + $0x360] ss:$16 sps:$4 sm:$0xff]  }
  0x82   : > { %1866 = vmatpush1.bf16.msra.mxu0 %v5743_v52  ;;  %2030 = vmatpush1.bf16.msra.mxu1 %v5744_v53  ;;  %v5834_v52 = vld [vmem:[#allocation2 + $0x368] ss:$16 sps:$4 sm:$0xff]   ;;  %v5839_v53 = vld [vmem:[#allocation2 + $0x384] ss:$16 sps:$4 sm:$0xff]  }
  0x83   : > { %1867 = vmatprep.subr.bf16.mxu0 %v5745_v54  ;;  %2031 = vmatprep.subr.bf16.mxu1 %v5747_v55  ;;  %v5842_v54 = vld [vmem:[#allocation2 + $0x38c] ss:$16 sps:$4 sm:$0xff]   ;;  %v5837_v55 = vld [vmem:[#allocation2 + $0x380] ss:$16 sps:$4 sm:$0xff]  }
  0x86   : > { %1868 = vmatpush1.bf16.msra.mxu0 %v5749_v56  ;;  %2032 = vmatpush1.bf16.msra.mxu1 %v5750_v57  ;;  %v5840_v56 = vld [vmem:[#allocation2 + $0x388] ss:$16 sps:$4 sm:$0xff]   ;;  %v5845_v57 = vld [vmem:[#allocation2 + $0x3a4] ss:$16 sps:$4 sm:$0xff]  }
  0x87   : > { %1869 = vmatprep.subr.bf16.mxu0 %v5751_v58  ;;  %2033 = vmatprep.subr.bf16.mxu1 %v5753_v59  ;;  %v5848_v58 = vld [vmem:[#allocation2 + $0x3ac] ss:$16 sps:$4 sm:$0xff]   ;;  %v5843_v59 = vld [vmem:[#allocation2 + $0x3a0] ss:$16 sps:$4 sm:$0xff]  }
  0x8a   : > { %1870 = vmatpush1.bf16.msra.mxu0 %v5755_v60  ;;  %2034 = vmatpush1.bf16.msra.mxu1 %v5756_v61  ;;  %v5846_v60 = vld [vmem:[#allocation2 + $0x3a8] ss:$16 sps:$4 sm:$0xff]   ;;  %v5851_v61 = vld [vmem:[#allocation2 + $0x3c4] ss:$16 sps:$4 sm:$0xff]  }
  0x8b   : > { %1871 = vmatprep.subr.bf16.mxu0 %v5757_v62  ;;  %2035 = vmatprep.subr.bf16.mxu1 %v5759_v63  ;;  %v5854_v62 = vld [vmem:[#allocation2 + $0x3cc] ss:$16 sps:$4 sm:$0xff]   ;;  %v5849_v63 = vld [vmem:[#allocation2 + $0x3c0] ss:$16 sps:$4 sm:$0xff]  }
  0x8e   : > { %1872 = vmatpush1.bf16.msra.mxu0 %v5761_v0  ;;  %2036 = vmatpush1.bf16.msra.mxu1 %v5762_v1  ;;  %v5852_v0 = vld [vmem:[#allocation2 + $0x3c8] ss:$16 sps:$4 sm:$0xff]   ;;  %v5857_v1 = vld [vmem:[#allocation2 + $0x3e4] ss:$16 sps:$4 sm:$0xff]  }
  0x8f   : > { %1882 = vmatprep.subr.bf16.mxu0 %v5767_v2  ;;  %2046 = vmatprep.subr.bf16.mxu1 %v5770_v3  ;;  %v5860_v2 = vld [vmem:[#allocation2 + $0x3ec] ss:$16 sps:$4 sm:$0xff]   ;;  %v5855_v3 = vld [vmem:[#allocation2 + $0x3e0] ss:$16 sps:$4 sm:$0xff]  }
  0x91   : > { %1874 = vmatmul.mubr.bf16.vlgmr.msra.gmra.mrb[0].mxu0 %v4941_v4  ;;  %2038 = vmatmul.mubr.bf16.vlgmr.msra.gmra.mrb[0].mxu1 %v4941_v4  ;;  %v5858_v4 = vld [vmem:[#allocation2 + $0x3e8] ss:$16 sps:$4 sm:$0xff]  }
  0x92   : > { %1883 = vmatpush1.bf16.msra.mxu0 %v5765_v5  ;;  %2047 = vmatpush1.bf16.msra.mxu1 %v5768_v6  ;;  %v5865_v5 = vld [vmem:[#allocation2 + $0x404] ss:$16 sps:$4 sm:$0xff]   ;;  %v5868_v6 = vld [vmem:[#allocation2 + $0x40c] ss:$16 sps:$4 sm:$0xff]  }
  0x93   : > { %1884 = vmatprep.subr.bf16.mxu0 %v5773_v7  ;;  %2048 = vmatprep.subr.bf16.mxu1 %v5776_v8  ;;  %v4943_v7 = vcombine.low %v6832_v29, %v6832_v29  ;;  %v5863_v8 = vld [vmem:[#allocation2 + $0x400] ss:$16 sps:$4 sm:$0xff]   ;;  %v5898_v29 = vld [vmem:[#allocation2 + $0x4ac] ss:$16 sps:$4 sm:$0xff]  }
  0x94   : > { %1914 = vmatprep.mubr.bf16.mxu0 %v4944_v30  ;;  %2078 = vmatprep.mubr.bf16.mxu1 %v4944_v30  ;;  %v5893_v30 = vld [vmem:[#allocation2 + $0x4a0] ss:$16 sps:$4 sm:$0xff]  }
  0x96   : > { %1885 = vmatpush1.bf16.msra.mxu0 %v5771_v9  ;;  %2049 = vmatpush1.bf16.msra.mxu1 %v5774_v10  ;;  %v5866_v9 = vld [vmem:[#allocation2 + $0x408] ss:$16 sps:$4 sm:$0xff]   ;;  %v5871_v10 = vld [vmem:[#allocation2 + $0x424] ss:$16 sps:$4 sm:$0xff]  }
  0x97   : > { %1886 = vmatprep.subr.bf16.mxu0 %v5779_v11  ;;  %2050 = vmatprep.subr.bf16.mxu1 %v5782_v12  ;;  %v6839_v11 = vld [vmem:[%s6828_s19 + $0x10] sm:$0xff]  ;;  %v5874_v12 = vld [vmem:[#allocation2 + $0x42c] ss:$16 sps:$4 sm:$0xff]  }
  0x9a   : > { %1887 = vmatpush1.bf16.msra.mxu0 %v5777_v13  ;;  %2051 = vmatpush1.bf16.msra.mxu1 %v5780_v14  ;;  %v4946_v13 = vcombine.high %v6839_v11, %v6839_v11  ;;  %v5869_v14 = vld [vmem:[#allocation2 + $0x420] ss:$16 sps:$4 sm:$0xff]  }
  0x9b   : > { %1888 = vmatprep.subr.bf16.mxu0 %v5785_v15  ;;  %2052 = vmatprep.subr.bf16.mxu1 %v5788_v16  ;;  %v5872_v15 = vld [vmem:[#allocation2 + $0x428] ss:$16 sps:$4 sm:$0xff]   ;;  %v5877_v16 = vld [vmem:[#allocation2 + $0x444] ss:$16 sps:$4 sm:$0xff]  }
  0x9e   : > { %1889 = vmatpush1.bf16.msra.mxu0 %v5783_v17  ;;  %2053 = vmatpush1.bf16.msra.mxu1 %v5786_v18  ;;  %v5880_v17 = vld [vmem:[#allocation2 + $0x44c] ss:$16 sps:$4 sm:$0xff]   ;;  %v5875_v18 = vld [vmem:[#allocation2 + $0x440] ss:$16 sps:$4 sm:$0xff]  }
  0x9f   : > { %1890 = vmatprep.subr.bf16.mxu0 %v5791_v19  ;;  %2054 = vmatprep.subr.bf16.mxu1 %v5794_v20  ;;  %v5878_v19 = vld [vmem:[#allocation2 + $0x448] ss:$16 sps:$4 sm:$0xff]   ;;  %v5883_v20 = vld [vmem:[#allocation2 + $0x464] ss:$16 sps:$4 sm:$0xff]  }
  0xa2   : > { %1891 = vmatpush1.bf16.msra.mxu0 %v5789_v21  ;;  %2055 = vmatpush1.bf16.msra.mxu1 %v5792_v22  ;;  %v5886_v21 = vld [vmem:[#allocation2 + $0x46c] ss:$16 sps:$4 sm:$0xff]   ;;  %v5881_v22 = vld [vmem:[#allocation2 + $0x460] ss:$16 sps:$4 sm:$0xff]  }
  0xa3   : > { %1892 = vmatprep.subr.bf16.mxu0 %v5797_v23  ;;  %2056 = vmatprep.subr.bf16.mxu1 %v5800_v24  ;;  %v5884_v23 = vld [vmem:[#allocation2 + $0x468] ss:$16 sps:$4 sm:$0xff]   ;;  %v5889_v24 = vld [vmem:[#allocation2 + $0x484] ss:$16 sps:$4 sm:$0xff]  }
  0xa6   : > { %1893 = vmatpush1.bf16.msra.mxu0 %v5795_v25  ;;  %2057 = vmatpush1.bf16.msra.mxu1 %v5798_v26  ;;  %v5892_v25 = vld [vmem:[#allocation2 + $0x48c] ss:$16 sps:$4 sm:$0xff]   ;;  %v5887_v26 = vld [vmem:[#allocation2 + $0x480] ss:$16 sps:$4 sm:$0xff]  }
  0xa7   : > { %1894 = vmatprep.subr.bf16.mxu0 %v5803_v27  ;;  %2058 = vmatprep.subr.bf16.mxu1 %v5806_v28  ;;  %v5890_v27 = vld [vmem:[#allocation2 + $0x488] ss:$16 sps:$4 sm:$0xff]   ;;  %v5895_v28 = vld [vmem:[#allocation2 + $0x4a4] ss:$16 sps:$4 sm:$0xff]  }
  0xaa   : > { %1895 = vmatpush1.bf16.msra.mxu0 %v5801_v31  ;;  %2059 = vmatpush1.bf16.msra.mxu1 %v5804_v32  ;;  %v5896_v31 = vld [vmem:[#allocation2 + $0x4a8] ss:$16 sps:$4 sm:$0xff]   ;;  %v5901_v32 = vld [vmem:[#allocation2 + $0x4c4] ss:$16 sps:$4 sm:$0xff]  }
  0xab   : > { %1896 = vmatprep.subr.bf16.mxu0 %v5809_v33  ;;  %2060 = vmatprep.subr.bf16.mxu1 %v5812_v34  ;;  %v5904_v33 = vld [vmem:[#allocation2 + $0x4cc] ss:$16 sps:$4 sm:$0xff]   ;;  %v5899_v34 = vld [vmem:[#allocation2 + $0x4c0] ss:$16 sps:$4 sm:$0xff]  }
  0xae   : > { %1897 = vmatpush1.bf16.msra.mxu0 %v5807_v35  ;;  %2061 = vmatpush1.bf16.msra.mxu1 %v5810_v36  ;;  %v5902_v35 = vld [vmem:[#allocation2 + $0x4c8] ss:$16 sps:$4 sm:$0xff]   ;;  %v5907_v36 = vld [vmem:[#allocation2 + $0x4e4] ss:$16 sps:$4 sm:$0xff]  }
  0xaf   : > { %1898 = vmatprep.subr.bf16.mxu0 %v5815_v37  ;;  %2062 = vmatprep.subr.bf16.mxu1 %v5818_v38  ;;  %v5910_v37 = vld [vmem:[#allocation2 + $0x4ec] ss:$16 sps:$4 sm:$0xff]   ;;  %v5905_v38 = vld [vmem:[#allocation2 + $0x4e0] ss:$16 sps:$4 sm:$0xff]  }
  0xb2   : > { %1899 = vmatpush1.bf16.msra.mxu0 %v5813_v39  ;;  %2063 = vmatpush1.bf16.msra.mxu1 %v5816_v40  ;;  %v5908_v39 = vld [vmem:[#allocation2 + $0x4e8] ss:$16 sps:$4 sm:$0xff]   ;;  %v5913_v40 = vld [vmem:[#allocation2 + $0x504] ss:$16 sps:$4 sm:$0xff]  }
  0xb3   : > { %1900 = vmatprep.subr.bf16.mxu0 %v5821_v41  ;;  %2064 = vmatprep.subr.bf16.mxu1 %v5824_v42  ;;  %v5916_v41 = vld [vmem:[#allocation2 + $0x50c] ss:$16 sps:$4 sm:$0xff]   ;;  %v5911_v42 = vld [vmem:[#allocation2 + $0x500] ss:$16 sps:$4 sm:$0xff]  }
  0xb6   : > { %1901 = vmatpush1.bf16.msra.mxu0 %v5819_v43  ;;  %2065 = vmatpush1.bf16.msra.mxu1 %v5822_v44  ;;  %v5914_v43 = vld [vmem:[#allocation2 + $0x508] ss:$16 sps:$4 sm:$0xff]   ;;  %v5919_v44 = vld [vmem:[#allocation2 + $0x524] ss:$16 sps:$4 sm:$0xff]  }
  0xb7   : > { %1902 = vmatprep.subr.bf16.mxu0 %v5827_v45  ;;  %2066 = vmatprep.subr.bf16.mxu1 %v5830_v46  ;;  %v5922_v45 = vld [vmem:[#allocation2 + $0x52c] ss:$16 sps:$4 sm:$0xff]   ;;  %v5917_v46 = vld [vmem:[#allocation2 + $0x520] ss:$16 sps:$4 sm:$0xff]  }
  0xba   : > { %1903 = vmatpush1.bf16.msra.mxu0 %v5825_v47  ;;  %2067 = vmatpush1.bf16.msra.mxu1 %v5828_v48  ;;  %v5920_v47 = vld [vmem:[#allocation2 + $0x528] ss:$16 sps:$4 sm:$0xff]   ;;  %v5925_v48 = vld [vmem:[#allocation2 + $0x544] ss:$16 sps:$4 sm:$0xff]  }
  0xbb   : > { %1904 = vmatprep.subr.bf16.mxu0 %v5833_v49  ;;  %2068 = vmatprep.subr.bf16.mxu1 %v5836_v50  ;;  %v5928_v49 = vld [vmem:[#allocation2 + $0x54c] ss:$16 sps:$4 sm:$0xff]   ;;  %v5923_v50 = vld [vmem:[#allocation2 + $0x540] ss:$16 sps:$4 sm:$0xff]  }
  0xbe   : > { %1905 = vmatpush1.bf16.msra.mxu0 %v5831_v51  ;;  %2069 = vmatpush1.bf16.msra.mxu1 %v5834_v52  ;;  %v5926_v51 = vld [vmem:[#allocation2 + $0x548] ss:$16 sps:$4 sm:$0xff]   ;;  %v5931_v52 = vld [vmem:[#allocation2 + $0x564] ss:$16 sps:$4 sm:$0xff]  }
  0xbf   : > { %1906 = vmatprep.subr.bf16.mxu0 %v5839_v53  ;;  %2070 = vmatprep.subr.bf16.mxu1 %v5842_v54  ;;  %v5934_v53 = vld [vmem:[#allocation2 + $0x56c] ss:$16 sps:$4 sm:$0xff]   ;;  %v5929_v54 = vld [vmem:[#allocation2 + $0x560] ss:$16 sps:$4 sm:$0xff]  }
  0xc2   : > { %1907 = vmatpush1.bf16.msra.mxu0 %v5837_v55  ;;  %2071 = vmatpush1.bf16.msra.mxu1 %v5840_v56  ;;  %v5932_v55 = vld [vmem:[#allocation2 + $0x568] ss:$16 sps:$4 sm:$0xff]   ;;  %v5937_v56 = vld [vmem:[#allocation2 + $0x584] ss:$16 sps:$4 sm:$0xff]  }
  0xc3   : > { %1908 = vmatprep.subr.bf16.mxu0 %v5845_v57  ;;  %2072 = vmatprep.subr.bf16.mxu1 %v5848_v58  ;;  %v5940_v57 = vld [vmem:[#allocation2 + $0x58c] ss:$16 sps:$4 sm:$0xff]   ;;  %v5935_v58 = vld [vmem:[#allocation2 + $0x580] ss:$16 sps:$4 sm:$0xff]  }
  0xc6   : > { %1909 = vmatpush1.bf16.msra.mxu0 %v5843_v59  ;;  %2073 = vmatpush1.bf16.msra.mxu1 %v5846_v60  ;;  %v5938_v59 = vld [vmem:[#allocation2 + $0x588] ss:$16 sps:$4 sm:$0xff]   ;;  %v5943_v60 = vld [vmem:[#allocation2 + $0x5a4] ss:$16 sps:$4 sm:$0xff]  }
  0xc7   : > { %1910 = vmatprep.subr.bf16.mxu0 %v5851_v61  ;;  %2074 = vmatprep.subr.bf16.mxu1 %v5854_v62  ;;  %v5946_v61 = vld [vmem:[#allocation2 + $0x5ac] ss:$16 sps:$4 sm:$0xff]   ;;  %v5941_v62 = vld [vmem:[#allocation2 + $0x5a0] ss:$16 sps:$4 sm:$0xff]  }
  0xca   : > { %1911 = vmatpush1.bf16.msra.mxu0 %v5849_v63  ;;  %2075 = vmatpush1.bf16.msra.mxu1 %v5852_v0  ;;  %v5944_v63 = vld [vmem:[#allocation2 + $0x5a8] ss:$16 sps:$4 sm:$0xff]   ;;  %v5949_v0 = vld [vmem:[#allocation2 + $0x5c4] ss:$16 sps:$4 sm:$0xff]  }
  0xcb   : > { %1912 = vmatprep.subr.bf16.mxu0 %v5857_v1  ;;  %2076 = vmatprep.subr.bf16.mxu1 %v5860_v2  ;;  %v5952_v1 = vld [vmem:[#allocation2 + $0x5cc] ss:$16 sps:$4 sm:$0xff]   ;;  %v5947_v2 = vld [vmem:[#allocation2 + $0x5c0] ss:$16 sps:$4 sm:$0xff]  }
  0xce   : > { %1913 = vmatpush1.bf16.msra.mxu0 %v5855_v3  ;;  %2077 = vmatpush1.bf16.msra.mxu1 %v5858_v4  ;;  %v5950_v3 = vld [vmem:[#allocation2 + $0x5c8] ss:$16 sps:$4 sm:$0xff]   ;;  %v5955_v4 = vld [vmem:[#allocation2 + $0x5e4] ss:$16 sps:$4 sm:$0xff]  }
  0xcf   : > { %1923 = vmatprep.subr.bf16.mxu0 %v5865_v5  ;;  %2087 = vmatprep.subr.bf16.mxu1 %v5868_v6  ;;  %v5958_v5 = vld [vmem:[#allocation2 + $0x5ec] ss:$16 sps:$4 sm:$0xff]   ;;  %v5953_v6 = vld [vmem:[#allocation2 + $0x5e0] ss:$16 sps:$4 sm:$0xff]  }
  0xd1   : > { %1915 = vmatmul.mubr.bf16.vlgmr.msra.gmra.mrb[0].mxu0 %v4943_v7  ;;  %2079 = vmatmul.mubr.bf16.vlgmr.msra.gmra.mrb[0].mxu1 %v4943_v7  ;;  %v5956_v7 = vld [vmem:[#allocation2 + $0x5e8] ss:$16 sps:$4 sm:$0xff]  }
  0xd2   : > { %1924 = vmatpush1.bf16.msra.mxu0 %v5863_v8  ;;  %2088 = vmatpush1.bf16.msra.mxu1 %v5866_v9  ;;  %v5963_v8 = vld [vmem:[#allocation2 + $0x604] ss:$16 sps:$4 sm:$0xff]   ;;  %v5966_v9 = vld [vmem:[#allocation2 + $0x60c] ss:$16 sps:$4 sm:$0xff]  }
  0xd3   : > { %1925 = vmatprep.subr.bf16.mxu0 %v5871_v10  ;;  %2089 = vmatprep.subr.bf16.mxu1 %v5874_v12  ;;  %v5961_v10 = vld [vmem:[#allocation2 + $0x600] ss:$16 sps:$4 sm:$0xff]   ;;  %v5964_v12 = vld [vmem:[#allocation2 + $0x608] ss:$16 sps:$4 sm:$0xff]  }
  0xd4   : > { %1955 = vmatprep.mubr.bf16.mxu0 %v4946_v13  ;;  %2119 = vmatprep.mubr.bf16.mxu1 %v4946_v13  ;;  %v4945_v13 = vcombine.low %v6839_v11, %v6839_v11  ;;  %v5981_v11 = vld [vmem:[#allocation2 + $0x664] ss:$16 sps:$4 sm:$0xff]  }
  0xd6   : > { %1926 = vmatpush1.bf16.msra.mxu0 %v5869_v14  ;;  %2090 = vmatpush1.bf16.msra.mxu1 %v5872_v15  ;;  %v5969_v14 = vld [vmem:[#allocation2 + $0x624] ss:$16 sps:$4 sm:$0xff]   ;;  %v5972_v15 = vld [vmem:[#allocation2 + $0x62c] ss:$16 sps:$4 sm:$0xff]  }
  0xd7   : > { %1927 = vmatprep.subr.bf16.mxu0 %v5877_v16  ;;  %2091 = vmatprep.subr.bf16.mxu1 %v5880_v17  ;;  %v5967_v16 = vld [vmem:[#allocation2 + $0x620] ss:$16 sps:$4 sm:$0xff]   ;;  %v5970_v17 = vld [vmem:[#allocation2 + $0x628] ss:$16 sps:$4 sm:$0xff]  }
  0xda   : > { %1928 = vmatpush1.bf16.msra.mxu0 %v5875_v18  ;;  %2092 = vmatpush1.bf16.msra.mxu1 %v5878_v19  ;;  %v5975_v18 = vld [vmem:[#allocation2 + $0x644] ss:$16 sps:$4 sm:$0xff]   ;;  %v5978_v19 = vld [vmem:[#allocation2 + $0x64c] ss:$16 sps:$4 sm:$0xff]  }
  0xdb   : > { %1929 = vmatprep.subr.bf16.mxu0 %v5883_v20  ;;  %2093 = vmatprep.subr.bf16.mxu1 %v5886_v21  ;;  %v5973_v20 = vld [vmem:[#allocation2 + $0x640] ss:$16 sps:$4 sm:$0xff]   ;;  %v5976_v21 = vld [vmem:[#allocation2 + $0x648] ss:$16 sps:$4 sm:$0xff]  }
  0xde   : > { %1930 = vmatpush1.bf16.msra.mxu0 %v5881_v22  ;;  %2094 = vmatpush1.bf16.msra.mxu1 %v5884_v23  ;;  %v6638_v22 = vmov 0   ;;  %v5984_v23 = vld [vmem:[#allocation2 + $0x66c] ss:$16 sps:$4 sm:$0xff]  }
  0xdf   : > { %1931 = vmatprep.subr.bf16.mxu0 %v5889_v24  ;;  %2095 = vmatprep.subr.bf16.mxu1 %v5892_v25  ;;  %v5979_v24 = vld [vmem:[#allocation2 + $0x660] ss:$16 sps:$4 sm:$0xff]   ;;  %v5982_v25 = vld [vmem:[#allocation2 + $0x668] ss:$16 sps:$4 sm:$0xff]  }
  0xe2   : > { %1932 = vmatpush1.bf16.msra.mxu0 %v5887_v26  ;;  %2096 = vmatpush1.bf16.msra.mxu1 %v5890_v27  ;;  %v5987_v26 = vld [vmem:[#allocation2 + $0x684] ss:$16 sps:$4 sm:$0xff]   ;;  %v5990_v27 = vld [vmem:[#allocation2 + $0x68c] ss:$16 sps:$4 sm:$0xff]  }
  0xe3   : > { %1933 = vmatprep.subr.bf16.mxu0 %v5895_v28  ;;  %2097 = vmatprep.subr.bf16.mxu1 %v5898_v29  ;;  %v5985_v28 = vld [vmem:[#allocation2 + $0x680] ss:$16 sps:$4 sm:$0xff]   ;;  %v5988_v29 = vld [vmem:[#allocation2 + $0x688] ss:$16 sps:$4 sm:$0xff]  }
  0xe6   : > { %1934 = vmatpush1.bf16.msra.mxu0 %v5893_v30  ;;  %2098 = vmatpush1.bf16.msra.mxu1 %v5896_v31  ;;  %v5993_v30 = vld [vmem:[#allocation2 + $0x6a4] ss:$16 sps:$4 sm:$0xff]   ;;  %v5996_v31 = vld [vmem:[#allocation2 + $0x6ac] ss:$16 sps:$4 sm:$0xff]  }
  0xe7   : > { %1935 = vmatprep.subr.bf16.mxu0 %v5901_v32  ;;  %2099 = vmatprep.subr.bf16.mxu1 %v5904_v33  ;;  %v5991_v32 = vld [vmem:[#allocation2 + $0x6a0] ss:$16 sps:$4 sm:$0xff]   ;;  %v5994_v33 = vld [vmem:[#allocation2 + $0x6a8] ss:$16 sps:$4 sm:$0xff]  }
  0xea   : > { %1936 = vmatpush1.bf16.msra.mxu0 %v5899_v34  ;;  %2100 = vmatpush1.bf16.msra.mxu1 %v5902_v35  ;;  %v5999_v34 = vld [vmem:[#allocation2 + $0x6c4] ss:$16 sps:$4 sm:$0xff]   ;;  %v6002_v35 = vld [vmem:[#allocation2 + $0x6cc] ss:$16 sps:$4 sm:$0xff]  }
  0xeb   : > { %1937 = vmatprep.subr.bf16.mxu0 %v5907_v36  ;;  %2101 = vmatprep.subr.bf16.mxu1 %v5910_v37  ;;  %v5997_v36 = vld [vmem:[#allocation2 + $0x6c0] ss:$16 sps:$4 sm:$0xff]   ;;  %v6000_v37 = vld [vmem:[#allocation2 + $0x6c8] ss:$16 sps:$4 sm:$0xff]  }
  0xee   : > { %1938 = vmatpush1.bf16.msra.mxu0 %v5905_v38  ;;  %2102 = vmatpush1.bf16.msra.mxu1 %v5908_v39  ;;  %v6005_v38 = vld [vmem:[#allocation2 + $0x6e4] ss:$16 sps:$4 sm:$0xff]   ;;  %v6008_v39 = vld [vmem:[#allocation2 + $0x6ec] ss:$16 sps:$4 sm:$0xff]  }
  0xef   : > { %1939 = vmatprep.subr.bf16.mxu0 %v5913_v40  ;;  %2103 = vmatprep.subr.bf16.mxu1 %v5916_v41  ;;  %v6003_v40 = vld [vmem:[#allocation2 + $0x6e0] ss:$16 sps:$4 sm:$0xff]   ;;  %v6006_v41 = vld [vmem:[#allocation2 + $0x6e8] ss:$16 sps:$4 sm:$0xff]  }
  0xf2   : > { %1940 = vmatpush1.bf16.msra.mxu0 %v5911_v42  ;;  %2104 = vmatpush1.bf16.msra.mxu1 %v5914_v43  ;;  %v6012_v42 = vld [vmem:[%s7305_s4 + $0x4] ss:$8 sps:$4 sm:$0xff]   ;;  %v6009_v43 = vld [vmem:[%s6828_s19 + $0x18] ss:$0 sps:$4 sm:$0xff]   ;;  %s4808_s19 = sshll.u32 %s7237_s15, 4  ;;  %s7257_s19 = int_to_ptr.vmem [resolvable:$true] %s4808_s19 }
  0xf3   : > { %1941 = vmatprep.subr.bf16.mxu0 %v5919_v44  ;;  %2105 = vmatprep.subr.bf16.mxu1 %v5922_v45  ;;  %v6010_v44 = vld [vmem:[%s7305_s4] ss:$8 sps:$4 sm:$0xff]   ;;  %v6015_v45 = vld [vmem:[%s7305_s4 + $0x14] ss:$8 sps:$4 sm:$0xff]   ;;  %s6560_s14 = scalar_lea.vmem %s7257_s19, 896 }
  0xf4   : > { %p6561_p10 = scmp.ne.s32.totalorder %s7257_s19, %s6560_s14 }
  0xf6   : > { %1942 = vmatpush1.bf16.msra.mxu0 %v5917_v46  ;;  %2106 = vmatpush1.bf16.msra.mxu1 %v5920_v47  ;;  %v6013_v46 = vld [vmem:[%s7305_s4 + $0x10] ss:$8 sps:$4 sm:$0xff]   ;;  %v6018_v47 = vld [vmem:[%s7305_s4 + $0x24] ss:$8 sps:$4 sm:$0xff]   ;;  %p6562_p2 = pnand %p6561_p10, %p7335_p1 }
  0xf7   : > { %1943 = vmatprep.subr.bf16.mxu0 %v5925_v48  ;;  %2107 = vmatprep.subr.bf16.mxu1 %v5928_v49  ;;  %v6016_v48 = vld [vmem:[%s7305_s4 + $0x20] ss:$8 sps:$4 sm:$0xff]   ;;  %v6021_v49 = vld [vmem:[%s7305_s4 + $0x34] ss:$8 sps:$4 sm:$0xff]  }
  0xf8   : > { %p6563_p3 = pneg %p6562_p2 }
  0xfa   : > { %1944 = vmatpush1.bf16.msra.mxu0 %v5923_v50  ;;  %2108 = vmatpush1.bf16.msra.mxu1 %v5926_v51  ;;  %v6019_v50 = vld [vmem:[%s7305_s4 + $0x30] ss:$8 sps:$4 sm:$0xff]   ;;  %v6024_v51 = vld [vmem:[%s7305_s4 + $0x44] ss:$8 sps:$4 sm:$0xff]  }
  0xfb   : > { %1945 = vmatprep.subr.bf16.mxu0 %v5931_v52  ;;  %2109 = vmatprep.subr.bf16.mxu1 %v5934_v53  ;;  %v6022_v52 = vld [vmem:[%s7305_s4 + $0x40] ss:$8 sps:$4 sm:$0xff]   ;;  %v6027_v53 = vld [vmem:[%s7305_s4 + $0x54] ss:$8 sps:$4 sm:$0xff]  }
  0xfe   : > { %1946 = vmatpush1.bf16.msra.mxu0 %v5929_v54  ;;  %2110 = vmatpush1.bf16.msra.mxu1 %v5932_v55  ;;  %v6025_v54 = vld [vmem:[%s7305_s4 + $0x50] ss:$8 sps:$4 sm:$0xff]   ;;  %v6030_v55 = vld [vmem:[%s7305_s4 + $0x64] ss:$8 sps:$4 sm:$0xff]  }
  0xff   : > { %1947 = vmatprep.subr.bf16.mxu0 %v5937_v56  ;;  %2111 = vmatprep.subr.bf16.mxu1 %v5940_v57  ;;  %v6028_v56 = vld [vmem:[%s7305_s4 + $0x60] ss:$8 sps:$4 sm:$0xff]   ;;  %v6033_v57 = vld [vmem:[%s7305_s4 + $0x74] ss:$8 sps:$4 sm:$0xff]  }
 0x102   : > { %1948 = vmatpush1.bf16.msra.mxu0 %v5935_v58  ;;  %2112 = vmatpush1.bf16.msra.mxu1 %v5938_v59  ;;  %v6031_v58 = vld [vmem:[%s7305_s4 + $0x70] ss:$8 sps:$4 sm:$0xff]   ;;  %v6036_v59 = vld [vmem:[%s7305_s4 + $0x84] ss:$8 sps:$4 sm:$0xff]  }
 0x103   : > { %1949 = vmatprep.subr.bf16.mxu0 %v5943_v60  ;;  %2113 = vmatprep.subr.bf16.mxu1 %v5946_v61  ;;  %v6034_v60 = vld [vmem:[%s7305_s4 + $0x80] ss:$8 sps:$4 sm:$0xff]   ;;  %v6039_v61 = vld [vmem:[%s7305_s4 + $0x94] ss:$8 sps:$4 sm:$0xff]  }
 0x106   : > { %1950 = vmatpush1.bf16.msra.mxu0 %v5941_v62  ;;  %2114 = vmatpush1.bf16.msra.mxu1 %v5944_v63  ;;  %v6037_v62 = vld [vmem:[%s7305_s4 + $0x90] ss:$8 sps:$4 sm:$0xff]   ;;  %v6042_v63 = vld [vmem:[%s7305_s4 + $0xa4] ss:$8 sps:$4 sm:$0xff]  }
 0x107   : > { %1951 = vmatprep.subr.bf16.mxu0 %v5949_v0  ;;  %2115 = vmatprep.subr.bf16.mxu1 %v5952_v1  ;;  %v6040_v0 = vld [vmem:[%s7305_s4 + $0xa0] ss:$8 sps:$4 sm:$0xff]   ;;  %v6045_v1 = vld [vmem:[%s7305_s4 + $0xb4] ss:$8 sps:$4 sm:$0xff]  }
 0x10a   : > { %1952 = vmatpush1.bf16.msra.mxu0 %v5947_v2  ;;  %2116 = vmatpush1.bf16.msra.mxu1 %v5950_v3  ;;  %v6043_v2 = vld [vmem:[%s7305_s4 + $0xb0] ss:$8 sps:$4 sm:$0xff]   ;;  %v6048_v3 = vld [vmem:[%s7305_s4 + $0xc4] ss:$8 sps:$4 sm:$0xff]  }
 0x10b   : > { %1953 = vmatprep.subr.bf16.mxu0 %v5955_v4  ;;  %2117 = vmatprep.subr.bf16.mxu1 %v5958_v5  ;;  %v6046_v4 = vld [vmem:[%s7305_s4 + $0xc0] ss:$8 sps:$4 sm:$0xff]   ;;  %v6051_v5 = vld [vmem:[%s7305_s4 + $0xd4] ss:$8 sps:$4 sm:$0xff]  }
 0x10e   : > { %1954 = vmatpush1.bf16.msra.mxu0 %v5953_v6  ;;  %2118 = vmatpush1.bf16.msra.mxu1 %v5956_v7  ;;  %v6049_v6 = vld [vmem:[%s7305_s4 + $0xd0] ss:$8 sps:$4 sm:$0xff]   ;;  %v6054_v7 = vld [vmem:[%s7305_s4 + $0xe4] ss:$8 sps:$4 sm:$0xff]  }
 0x10f   : > { %1964 = vmatprep.subr.bf16.mxu0 %v5963_v8  ;;  %2128 = vmatprep.subr.bf16.mxu1 %v5966_v9  ;;  %v6052_v8 = vld [vmem:[%s7305_s4 + $0xe0] ss:$8 sps:$4 sm:$0xff]   ;;  %v6057_v9 = vld [vmem:[%s7305_s4 + $0xf4] ss:$8 sps:$4 sm:$0xff]  }
 0x111   : > { %1956 = vmatmul.mubr.bf16.vlgmr.msra.gmra.mrb[0].mxu0 %v4945_v13  ;;  %2120 = vmatmul.mubr.bf16.vlgmr.msra.gmra.mrb[0].mxu1 %v4945_v13  ;;  %v6106_v13 = vld [vmem:[%s7307_s6] ss:$16 sps:$4 sm:$0xff]  }
 0x112   : > { %1965 = vmatpush1.bf16.msra.mxu0 %v5961_v10  ;;  %2129 = vmatpush1.bf16.msra.mxu1 %v5964_v12  ;;  %v6055_v10 = vld [vmem:[%s7305_s4 + $0xf0] ss:$8 sps:$4 sm:$0xff]   ;;  %v6060_v12 = vld [vmem:[%s7305_s4 + $0x104] ss:$8 sps:$4 sm:$0xff]  }
 0x113   : > { %1966 = vmatprep.subr.bf16.mxu0 %v5969_v14  ;;  %2130 = vmatprep.subr.bf16.mxu1 %v5972_v15  ;;  %v6108_v14 = vld [vmem:[%s7307_s6 + $0x4] ss:$16 sps:$4 sm:$0xff]  }
 0x114   : > { %1996 = vmatprep.mubr.bf16.mxu0 %v6638_v22  ;;  %2160 = vmatprep.mubr.bf16.mxu1 %v6638_v22  ;;  %v6111_v15 = vld [vmem:[%s7307_s6 + $0x24] ss:$16 sps:$4 sm:$0xff]  }
 0x116   : > { %1967 = vmatpush1.bf16.msra.mxu0 %v5967_v16  ;;  %2131 = vmatpush1.bf16.msra.mxu1 %v5970_v17  ;;  %v6109_v16 = vld [vmem:[%s7307_s6 + $0x20] ss:$16 sps:$4 sm:$0xff]   ;;  %v676_v17 = vlaneseq }
 0x117   : > { %1968 = vmatprep.subr.bf16.mxu0 %v5975_v18  ;;  %2132 = vmatprep.subr.bf16.mxu1 %v5978_v19 }
 0x118   : > { %v6960_v18 = vshrl.u32 %v676_v17, 7  ;;  %v6112_v17 = vld [vmem:[%s7307_s6 + $0x40] ss:$16 sps:$4 sm:$0xff]  }
 0x11a   : > { %1969 = vmatpush1.bf16.msra.mxu0 %v5973_v20  ;;  %2133 = vmatpush1.bf16.msra.mxu1 %v5976_v21  ;;  %v6963_v19 = vsub.s32 0, %v6960_v18  ;;  %v6968_v20 = vld [vmem:[%s7304_s3] sm:$0xf]  ;;  %v6971_v21 = vsub.s32 1, %v6960_v18 }
 0x11b   : > { %1970 = vmatprep.subr.bf16.mxu0 %v5981_v11  ;;  %2134 = vmatprep.subr.bf16.mxu1 %v5984_v23  ;;  %v6974_v11 = vsub.s32 3, %v6960_v18 }
 0x11c   : > { %v679_v23 = vrot.slane %v6968_v20, %v6963_v19 }
 0x11e   : > { %1971 = vmatpush1.bf16.msra.mxu0 %v5979_v24  ;;  %2135 = vmatpush1.bf16.msra.mxu1 %v5982_v25  ;;  %v683_v24 = vrot.slane %v6968_v20, %v6971_v21  ;;  %v691_v25 = vrot.slane %v6968_v20, %v6974_v11 }
 0x11f   : > { %1972 = vmatprep.subr.bf16.mxu0 %v5987_v26  ;;  %2136 = vmatprep.subr.bf16.mxu1 %v5990_v27 }
 0x122   : > { %1973 = vmatpush1.bf16.msra.mxu0 %v5985_v28  ;;  %2137 = vmatpush1.bf16.msra.mxu1 %v5988_v29 }
 0x123   : > { %1974 = vmatprep.subr.bf16.mxu0 %v5993_v30  ;;  %2138 = vmatprep.subr.bf16.mxu1 %v5996_v31 }
 0x126   : > { %1975 = vmatpush1.bf16.msra.mxu0 %v5991_v32  ;;  %2139 = vmatpush1.bf16.msra.mxu1 %v5994_v33 }
 0x127   : > { %1976 = vmatprep.subr.bf16.mxu0 %v5999_v34  ;;  %2140 = vmatprep.subr.bf16.mxu1 %v6002_v35 }
 0x12a   : > { %1977 = vmatpush1.bf16.msra.mxu0 %v5997_v36  ;;  %2141 = vmatpush1.bf16.msra.mxu1 %v6000_v37 }
 0x12b   : > { %1978 = vmatprep.subr.bf16.mxu0 %v6005_v38  ;;  %2142 = vmatprep.subr.bf16.mxu1 %v6008_v39 }
 0x12e   : > { %1979 = vmatpush1.bf16.msra.mxu0 %v6003_v40  ;;  %2143 = vmatpush1.bf16.msra.mxu1 %v6006_v41  ;;  %v6058_v41 = vld [vmem:[%s7305_s4 + $0x100] ss:$8 sps:$4 sm:$0xff]  }
 0x12f   : > { %2573 = vmatprep.subr.bf16.mxu0 %v6012_v42  ;;  %2878 = vmatprep.subr.bf16.mxu1 %v6108_v14 }
 0x131   : > { %1997 = vmatmul.mubr.bf16.vlgmr.msra.gmra.mrb[0].mxu0 %v6009_v43  ;;  %2161 = vmatmul.mubr.bf16.vlgmr.msra.gmra.mrb[0].mxu1 %v6009_v43  ;;  %v6063_v43 = vld [vmem:[%s7305_s4 + $0x114] ss:$8 sps:$4 sm:$0xff]  }
 0x132   : > { %2574 = vmatpush1.bf16.msra.mxu0 %v6010_v44  ;;  %2910 = vmatprep.mubr.bf16.mxu1 %v6638_v22 }
 0x133   : > { %2575 = vmatprep.subr.bf16.mxu0 %v6015_v45  ;;  %2879 = vmatpush1.bf16.msra.mxu1 %v6106_v13  ;;  %v6061_v45 = vld [vmem:[%s7305_s4 + $0x110] ss:$8 sps:$4 sm:$0xff]  }
 0x134   : > { %2880 = vmatprep.subr.bf16.mxu1 %v6111_v15  ;;  %v6103_v13 = vld [vmem:[%s7305_s4 + $0x1f0] ss:$8 sps:$4 sm:$0xff]  }
 0x136   : > { %2576 = vmatpush1.bf16.msra.mxu0 %v6013_v46  ;;  %v6066_v46 = vld [vmem:[%s7305_s4 + $0x124] ss:$8 sps:$4 sm:$0xff]  }
 0x137   : > { %2577 = vmatprep.subr.bf16.mxu0 %v6018_v47  ;;  %2881 = vmatpush1.bf16.msra.mxu1 %v6109_v16  ;;  %v6064_v47 = vld [vmem:[%s7305_s4 + $0x120] ss:$8 sps:$4 sm:$0xff]   ;;  %v6114_v16 = vld [vmem:[%s7307_s6 + $0x44] ss:$16 sps:$4 sm:$0xff]  }
 0x138   : > { %2882 = vmatprep.subr.bf16.mxu1 %v6114_v16  ;;  %v6135_v16 = vld [vmem:[%s7307_s6 + $0x2c] ss:$16 sps:$4 sm:$0xff]  }
 0x13a   : > { %2578 = vmatpush1.bf16.msra.mxu0 %v6016_v48  ;;  %v6069_v48 = vld [vmem:[%s7305_s4 + $0x134] ss:$8 sps:$4 sm:$0xff]  }
 0x13b   : > { %2579 = vmatprep.subr.bf16.mxu0 %v6021_v49  ;;  %v6067_v49 = vld [vmem:[%s7305_s4 + $0x130] ss:$8 sps:$4 sm:$0xff]   ;;  %2883 = vmatpush1.bf16.msra.mxu1 %v6112_v17 }
 0x13c   : > { %v6133_v17 = vld [vmem:[%s7307_s6 + $0x28] ss:$16 sps:$4 sm:$0xff]  }
 0x13e   : > { %2580 = vmatpush1.bf16.msra.mxu0 %v6019_v50  ;;  %v6072_v50 = vld [vmem:[%s7305_s4 + $0x144] ss:$8 sps:$4 sm:$0xff]  }
 0x13f   : > { %2581 = vmatprep.subr.bf16.mxu0 %v6024_v51  ;;  %v6070_v51 = vld [vmem:[%s7305_s4 + $0x140] ss:$8 sps:$4 sm:$0xff]  }
 0x142   : > { %2582 = vmatpush1.bf16.msra.mxu0 %v6022_v52  ;;  %v6075_v52 = vld [vmem:[%s7305_s4 + $0x154] ss:$8 sps:$4 sm:$0xff]  }
 0x143   : > { %2583 = vmatprep.subr.bf16.mxu0 %v6027_v53  ;;  %v6073_v53 = vld [vmem:[%s7305_s4 + $0x150] ss:$8 sps:$4 sm:$0xff]  }
 0x146   : > { %2584 = vmatpush1.bf16.msra.mxu0 %v6025_v54  ;;  %v6078_v54 = vld [vmem:[%s7305_s4 + $0x164] ss:$8 sps:$4 sm:$0xff]  }
 0x147   : > { %2585 = vmatprep.subr.bf16.mxu0 %v6030_v55  ;;  %v6076_v55 = vld [vmem:[%s7305_s4 + $0x160] ss:$8 sps:$4 sm:$0xff]  }
 0x14a   : > { %2586 = vmatpush1.bf16.msra.mxu0 %v6028_v56  ;;  %v6081_v56 = vld [vmem:[%s7305_s4 + $0x174] ss:$8 sps:$4 sm:$0xff]  }
 0x14b   : > { %2587 = vmatprep.subr.bf16.mxu0 %v6033_v57  ;;  %v6079_v57 = vld [vmem:[%s7305_s4 + $0x170] ss:$8 sps:$4 sm:$0xff]  }
 0x14e   : > { %2588 = vmatpush1.bf16.msra.mxu0 %v6031_v58  ;;  %v6084_v58 = vld [vmem:[%s7305_s4 + $0x184] ss:$8 sps:$4 sm:$0xff]  }
 0x14f   : > { %2589 = vmatprep.subr.bf16.mxu0 %v6036_v59  ;;  %v6082_v59 = vld [vmem:[%s7305_s4 + $0x180] ss:$8 sps:$4 sm:$0xff]  }
 0x152   : > { %2590 = vmatpush1.bf16.msra.mxu0 %v6034_v60  ;;  %v6087_v60 = vld [vmem:[%s7305_s4 + $0x194] ss:$8 sps:$4 sm:$0xff]  }
 0x153   : > { %2591 = vmatprep.subr.bf16.mxu0 %v6039_v61  ;;  %v6085_v61 = vld [vmem:[%s7305_s4 + $0x190] ss:$8 sps:$4 sm:$0xff]  }
 0x156   : > { %2592 = vmatpush1.bf16.msra.mxu0 %v6037_v62  ;;  %v6090_v62 = vld [vmem:[%s7305_s4 + $0x1a4] ss:$8 sps:$4 sm:$0xff]  }
 0x157   : > { %2593 = vmatprep.subr.bf16.mxu0 %v6042_v63  ;;  %v6088_v63 = vld [vmem:[%s7305_s4 + $0x1a0] ss:$8 sps:$4 sm:$0xff]  }
 0x15a   : > { %2594 = vmatpush1.bf16.msra.mxu0 %v6040_v0  ;;  %v6093_v0 = vld [vmem:[%s7305_s4 + $0x1b4] ss:$8 sps:$4 sm:$0xff]  }
 0x15b   : > { %2595 = vmatprep.subr.bf16.mxu0 %v6045_v1  ;;  %v6091_v1 = vld [vmem:[%s7305_s4 + $0x1b0] ss:$8 sps:$4 sm:$0xff]  }
 0x15e   : > { %2596 = vmatpush1.bf16.msra.mxu0 %v6043_v2  ;;  %v6096_v2 = vld [vmem:[%s7305_s4 + $0x1c4] ss:$8 sps:$4 sm:$0xff]  }
 0x15f   : > { %2597 = vmatprep.subr.bf16.mxu0 %v6048_v3  ;;  %v6094_v3 = vld [vmem:[%s7305_s4 + $0x1c0] ss:$8 sps:$4 sm:$0xff]  }
 0x162   : > { %2598 = vmatpush1.bf16.msra.mxu0 %v6046_v4  ;;  %v7060_v4 = vsub.s32 2, %v6960_v18 }
 0x163   : > { %2599 = vmatprep.subr.bf16.mxu0 %v6051_v5  ;;  %v6099_v5 = vld [vmem:[%s7305_s4 + $0x1d4] ss:$8 sps:$4 sm:$0xff]  }
 0x166   : > { %2600 = vmatpush1.bf16.msra.mxu0 %v6049_v6  ;;  %v6097_v6 = vld [vmem:[%s7305_s4 + $0x1d0] ss:$8 sps:$4 sm:$0xff]  }
 0x167   : > { %2601 = vmatprep.subr.bf16.mxu0 %v6054_v7  ;;  %v687_v7 = vrot.slane %v6968_v20, %v7060_v4  ;;  %v6117_v20 = vld [vmem:[%s7307_s6 + $0x64] ss:$16 sps:$4 sm:$0xff]  }
 0x168   : > { %2884 = vmatprep.subr.bf16.mxu1 %v6117_v20  ;;  %v6138_v20 = vld [vmem:[%s7307_s6 + $0x4c] ss:$16 sps:$4 sm:$0xff]  }
 0x16a   : > { %2602 = vmatpush1.bf16.msra.mxu0 %v6052_v8  ;;  %v6102_v8 = vld [vmem:[%s7305_s4 + $0x1e4] ss:$8 sps:$4 sm:$0xff]  }
 0x16b   : > { %2603 = vmatprep.subr.bf16.mxu0 %v6057_v9  ;;  %v6100_v9 = vld [vmem:[%s7305_s4 + $0x1e0] ss:$8 sps:$4 sm:$0xff]  }
 0x16e   : > { %2604 = vmatpush1.bf16.msra.mxu0 %v6055_v10 }
 0x16f   : > { %2614 = vmatprep.subr.bf16.mxu0 %v6060_v12  ;;  %v6105_v12 = vld [vmem:[%s7305_s4 + $0x1f4] ss:$8 sps:$4 sm:$0xff]  }
 0x204   : > { %v1998_v26 = vpop.f32.mrb[0].mxu0  ;;  %v6982_v27 = vpop.f32.mrb[0].mxu1 }
 0x205   : > { %v5547_v28 = vadd.f32 %v1998_v26, %v679_v23  ;;  %v2000_v29 = vpop.f32.mrb[1].mxu0  ;;  %v2164_v30 = vpop.f32.mrb[1].mxu1  ;;  %v5549_v10 = vadd.f32 %v6982_v27, %v687_v7  ;;  %v6115_v23 = vld [vmem:[%s7307_s6 + $0x60] ss:$16 sps:$4 sm:$0xff]   ;;  %v6123_v26 = vld [vmem:[%s7307_s6 + $0xa4] ss:$16 sps:$4 sm:$0xff]  }
 0x206   : > { %v5548_v31 = vadd.f32 %v2000_v29, %v683_v24  ;;  %v5550_v32 = vadd.f32 %v2164_v30, %v691_v25  ;;  %v2002_v33 = vpop.f32.mrb[2].mxu0  ;;  %v2166_v34 = vpop.f32.mrb[2].mxu1  ;;  %2885 = vmatpush1.bf16.msra.mxu1 %v6115_v23  ;;  %v6120_v24 = vld [vmem:[%s7307_s6 + $0x84] ss:$16 sps:$4 sm:$0xff]   ;;  %v6118_v25 = vld [vmem:[%s7307_s6 + $0x80] ss:$16 sps:$4 sm:$0xff]  }
 0x207   : > { %v2169_v35 = vmax.f32 %v5547_v28, 0.0  ;;  %v2003_v36 = vpop.f32.mrb[3].mxu0  ;;  %v2167_v37 = vpop.f32.mrb[3].mxu1  ;;  %v2171_v14 = vmax.f32 %v5549_v10, 0.0  ;;  %2886 = vmatprep.subr.bf16.mxu1 %v6120_v24  ;;  %v6121_v27 = vld [vmem:[%s7307_s6 + $0xa0] ss:$16 sps:$4 sm:$0xff]  }
 0x208   : > { %v2170_v38 = vmax.f32 %v5548_v31, 0.0  ;;  %v2172_v39 = vmax.f32 %v5550_v32, 0.0  ;;  %v6126_v28 = vld [vmem:[%s7307_s6 + $0xc4] ss:$16 sps:$4 sm:$0xff]   ;;  %v6124_v29 = vld [vmem:[%s7307_s6 + $0xc0] ss:$16 sps:$4 sm:$0xff]  }
 0x209   : > { %v2173_v42 = vpack.c.bf16 %v2169_v35, %v2169_v35  ;;  %v2175_v15 = vpack.c.bf16 %v2171_v14, %v2171_v14  ;;  %v6129_v30 = vld [vmem:[%s7307_s6 + $0xe4] ss:$16 sps:$4 sm:$0xff]   ;;  %v6127_v31 = vld [vmem:[%s7307_s6 + $0xe0] ss:$16 sps:$4 sm:$0xff]   ;;  %v6132_v32 = vld [vmem:[%s7307_s6 + $0xc] ss:$16 sps:$4 sm:$0xff]  }
 0x20a   : > { %v2174_v40 = vpack.c.bf16 %v2170_v38, %v2170_v38  ;;  %v2176_v44 = vpack.c.bf16 %v2172_v39, %v2172_v39  ;;  %2887 = vmatpush1.bf16.msra.mxu1 %v6118_v25  ;;  %v6157_v33 = vld [vmem:[#allocation5 + $0x8] ss:$28 sps:$4 sm:$0xff]   ;;  %v6163_v36 = vld [vmem:[#allocation5 + $0x40] ss:$28 sps:$4 sm:$0xff]   ;;  %v6169_v38 = vld [vmem:[#allocation5 + $0x78] ss:$28 sps:$4 sm:$0xff]  }
 0x20b   : > { %2888 = vmatprep.subr.bf16.mxu1 %v6123_v26  ;;  %v6159_v34 = vld [vmem:[#allocation5 + $0xc] ss:$28 sps:$4 sm:$0xff]   ;;  %v6165_v35 = vld [vmem:[#allocation5 + $0x44] ss:$28 sps:$4 sm:$0xff]   ;;  %v6171_v37 = vld [vmem:[#allocation5 + $0x7c] ss:$28 sps:$4 sm:$0xff]  }
 0x20c   : > { %2605 = vmatprep.mubr.bf16.mxu0 %v2174_v40  ;;  %v6177_v39 = vld [vmem:[#allocation5 + $0xb4] ss:$28 sps:$4 sm:$0xff]   ;;  %v6130_v14 = vld [vmem:[%s7307_s6 + $0x8] ss:$16 sps:$4 sm:$0xff]   ;;  %v6141_v24 = vld [vmem:[%s7307_s6 + $0x6c] ss:$16 sps:$4 sm:$0xff]  }
 0x20d   : > { %2606 = vmatmul.mubr.bf16.vlgmr.msra.gmra.mrb[4].mxu0 %v2173_v42  ;;  %v6175_v40 = vld [vmem:[#allocation5 + $0xb0] ss:$28 sps:$4 sm:$0xff]   ;;  %v6181_v42 = vld [vmem:[#allocation5 + $0xe8] ss:$28 sps:$4 sm:$0xff]  }
 0x20e   : > { %2615 = vmatpush1.bf16.msra.mxu0 %v6058_v41  ;;  %2646 = vmatprep.mubr.bf16.mxu0 %v2176_v44  ;;  %v6183_v41 = vld [vmem:[#allocation5 + $0xec] ss:$28 sps:$4 sm:$0xff]   ;;  %v6187_v44 = vld [vmem:[#allocation5 + $0x120] ss:$28 sps:$4 sm:$0xff]  }
 0x20f   : > { %2616 = vmatprep.subr.bf16.mxu0 %v6063_v43  ;;  %2889 = vmatpush1.bf16.msra.mxu1 %v6121_v27  ;;  %v6189_v43 = vld [vmem:[#allocation5 + $0x124] ss:$28 sps:$4 sm:$0xff]   ;;  %v6136_v23 = vld [vmem:[%s7307_s6 + $0x48] ss:$16 sps:$4 sm:$0xff]   ;;  %v6144_v25 = vld [vmem:[%s7307_s6 + $0x8c] ss:$16 sps:$4 sm:$0xff]  }
 0x210   : > { %2890 = vmatprep.subr.bf16.mxu1 %v6126_v28  ;;  %v6142_v26 = vld [vmem:[%s7307_s6 + $0x88] ss:$16 sps:$4 sm:$0xff]   ;;  %v6147_v27 = vld [vmem:[%s7307_s6 + $0xac] ss:$16 sps:$4 sm:$0xff]  }
 0x211   : > { %v6145_v28 = vld [vmem:[%s7307_s6 + $0xa8] ss:$16 sps:$4 sm:$0xff]  }
 0x212   : > { %2617 = vmatpush1.bf16.msra.mxu0 %v6061_v45  ;;  %v6195_v45 = vld [vmem:[#allocation5 + $0x15c] ss:$28 sps:$4 sm:$0xff]  }
 0x213   : > { %2618 = vmatprep.subr.bf16.mxu0 %v6066_v46  ;;  %2891 = vmatpush1.bf16.msra.mxu1 %v6124_v29  ;;  %v6193_v46 = vld [vmem:[#allocation5 + $0x158] ss:$28 sps:$4 sm:$0xff]   ;;  %v6150_v29 = vld [vmem:[%s7307_s6 + $0xcc] ss:$16 sps:$4 sm:$0xff]  }
 0x214   : > { %2892 = vmatprep.subr.bf16.mxu1 %v6129_v30  ;;  %v6148_v30 = vld [vmem:[%s7307_s6 + $0xc8] ss:$16 sps:$4 sm:$0xff]  }
 0x216   : > { %2619 = vmatpush1.bf16.msra.mxu0 %v6064_v47  ;;  %v6201_v47 = vld [vmem:[#allocation5 + $0x194] ss:$28 sps:$4 sm:$0xff]  }
 0x217   : > { %2620 = vmatprep.subr.bf16.mxu0 %v6069_v48  ;;  %2893 = vmatpush1.bf16.msra.mxu1 %v6127_v31  ;;  %v6199_v48 = vld [vmem:[#allocation5 + $0x190] ss:$28 sps:$4 sm:$0xff]  }
 0x218   : > { %2919 = vmatprep.subr.bf16.mxu1 %v6132_v32  ;;  %v6153_v31 = vld [vmem:[%s7307_s6 + $0xec] ss:$16 sps:$4 sm:$0xff]   ;;  %v6151_v32 = vld [vmem:[%s7307_s6 + $0xe8] ss:$16 sps:$4 sm:$0xff]  }
 0x21a   : > { %2621 = vmatpush1.bf16.msra.mxu0 %v6067_v49  ;;  %v6207_v49 = vld [vmem:[#allocation5 + $0x1cc] ss:$28 sps:$4 sm:$0xff]  }
 0x21b   : > { %2622 = vmatprep.subr.bf16.mxu0 %v6072_v50  ;;  %v6205_v50 = vld [vmem:[#allocation5 + $0x1c8] ss:$28 sps:$4 sm:$0xff]  }
 0x21e   : > { %2623 = vmatpush1.bf16.msra.mxu0 %v6070_v51  ;;  %v6213_v51 = vld [vmem:[#allocation5 + $0x204] ss:$28 sps:$4 sm:$0xff]  }
 0x21f   : > { %2624 = vmatprep.subr.bf16.mxu0 %v6075_v52  ;;  %v6211_v52 = vld [vmem:[#allocation5 + $0x200] ss:$28 sps:$4 sm:$0xff]  }
 0x222   : > { %2625 = vmatpush1.bf16.msra.mxu0 %v6073_v53  ;;  %v6219_v53 = vld [vmem:[#allocation5 + $0x23c] ss:$28 sps:$4 sm:$0xff]  }
 0x223   : > { %2626 = vmatprep.subr.bf16.mxu0 %v6078_v54  ;;  %v6217_v54 = vld [vmem:[#allocation5 + $0x238] ss:$28 sps:$4 sm:$0xff]  }
 0x226   : > { %2627 = vmatpush1.bf16.msra.mxu0 %v6076_v55  ;;  %v6225_v55 = vld [vmem:[#allocation5 + $0x274] ss:$28 sps:$4 sm:$0xff]  }
 0x227   : > { %2628 = vmatprep.subr.bf16.mxu0 %v6081_v56  ;;  %v6223_v56 = vld [vmem:[#allocation5 + $0x270] ss:$28 sps:$4 sm:$0xff]  }
 0x22a   : > { %2629 = vmatpush1.bf16.msra.mxu0 %v6079_v57  ;;  %v6231_v57 = vld [vmem:[#allocation5 + $0x2ac] ss:$28 sps:$4 sm:$0xff]  }
 0x22b   : > { %2630 = vmatprep.subr.bf16.mxu0 %v6084_v58  ;;  %v6229_v58 = vld [vmem:[#allocation5 + $0x2a8] ss:$28 sps:$4 sm:$0xff]  }
 0x22e   : > { %2631 = vmatpush1.bf16.msra.mxu0 %v6082_v59  ;;  %v6237_v59 = vld [vmem:[#allocation5 + $0x2e4] ss:$28 sps:$4 sm:$0xff]  }
 0x22f   : > { %2632 = vmatprep.subr.bf16.mxu0 %v6087_v60  ;;  %v6235_v60 = vld [vmem:[#allocation5 + $0x2e0] ss:$28 sps:$4 sm:$0xff]  }
 0x232   : > { %2633 = vmatpush1.bf16.msra.mxu0 %v6085_v61  ;;  %v2241_v61 = vld [vmem:[%s7306_s5] sm:$0x3] }
 0x233   : > { %2634 = vmatprep.subr.bf16.mxu0 %v6090_v62  ;;  %v2246_v62 = vrot.slane %v2241_v61, %v6963_v19 }
 0x236   : > { %2635 = vmatpush1.bf16.msra.mxu0 %v6088_v63  ;;  %v2250_v63 = vrot.slane %v2241_v61, %v6971_v21  ;;  %v6240_v61 = vld [vmem:[#allocation5 + $0x314] ss:$28 sps:$4 sm:$0xff]  }
 0x237   : > { %2636 = vmatprep.subr.bf16.mxu0 %v6093_v0 }
 0x23a   : > { %2637 = vmatpush1.bf16.msra.mxu0 %v6091_v1 }
 0x23b   : > { %2638 = vmatprep.subr.bf16.mxu0 %v6096_v2 }
 0x23e   : > { %2639 = vmatpush1.bf16.msra.mxu0 %v6094_v3 }
 0x23f   : > { %2640 = vmatprep.subr.bf16.mxu0 %v6099_v5 }
 0x242   : > { %2641 = vmatpush1.bf16.msra.mxu0 %v6097_v6 }
 0x243   : > { %2642 = vmatprep.subr.bf16.mxu0 %v6102_v8 }
 0x246   : > { %2643 = vmatpush1.bf16.msra.mxu0 %v6100_v9  ;;  %v2657_v9 = vld [vmem:[%s439_s12] sm:$0xff]  ;;  %s6564_s12 = sshll.u32 %s6639_s21, 4  ;;  %s6565_s12 = int_to_ptr.vmem [resolvable:$false] %s6564_s12 }
 0x247   : > { %2644 = vmatprep.subr.bf16.mxu0 %v6105_v12  ;;  %s6566_s17 = scalar_lea.vmem %s6565_s12, 1792  ;;  %p6567_p4 = scmp.lt.s32.totalorder %s7257_s19, %s6565_s12 }
 0x248   : > { %p6568_p7 = scmp.lt.s32.totalorder %s6566_s17, %s6560_s14 }
 0x24a   : > { %2645 = vmatpush1.bf16.msra.mxu0 %v6103_v13  ;;  %p6569_p8 = por %p6568_p7, %p6567_p4 }
 0x24b   : > { %4495 = vmatprep.subr.bf16.mxu0 %v6159_v34  ;;  %v6154_v34 = vld [vmem:[#allocation5] ss:$28 sps:$4 sm:$0xff]  }
 0x24c   : > { %p6570_p11 = pnand %p6569_p8, %p6563_p3 }
 0x24d   : > { %2647 = vmatmul.mubr.bf16.vlgmr.msra.gmra.mrb[4].mxu0 %v2175_v15 }
 0x24e   : > { %4496 = vmatpush1.bf16.msra.mxu0 %v6157_v33  ;;  %v6156_v33 = vld [vmem:[#allocation5 + $0x4] ss:$28 sps:$4 sm:$0xff]  }
 0x24f   : > { %4497 = vmatprep.subr.bf16.mxu0 %v6165_v35  ;;  %v6162_v35 = vld [vmem:[#allocation5 + $0x3c] ss:$28 sps:$4 sm:$0xff]  }
 0x252   : > { %4498 = vmatpush1.bf16.msra.mxu0 %v6163_v36  ;;  %v6160_v36 = vld [vmem:[#allocation5 + $0x38] ss:$28 sps:$4 sm:$0xff]  }
 0x253   : > { %4499 = vmatprep.subr.bf16.mxu0 %v6171_v37  ;;  %v6168_v37 = vld [vmem:[#allocation5 + $0x74] ss:$28 sps:$4 sm:$0xff]  }
 0x256   : > { %4500 = vmatpush1.bf16.msra.mxu0 %v6169_v38  ;;  %v6166_v38 = vld [vmem:[#allocation5 + $0x70] ss:$28 sps:$4 sm:$0xff]  }
 0x257   : > { %4501 = vmatprep.subr.bf16.mxu0 %v6177_v39  ;;  %v6174_v39 = vld [vmem:[#allocation5 + $0xac] ss:$28 sps:$4 sm:$0xff]  }
 0x25a   : > { %4502 = vmatpush1.bf16.msra.mxu0 %v6175_v40  ;;  %v6172_v40 = vld [vmem:[#allocation5 + $0xa8] ss:$28 sps:$4 sm:$0xff]  }
 0x25b   : > { %4503 = vmatprep.subr.bf16.mxu0 %v6183_v41  ;;  %v6180_v41 = vld [vmem:[#allocation5 + $0xe4] ss:$28 sps:$4 sm:$0xff]  }
 0x25e   : > { %4504 = vmatpush1.bf16.msra.mxu0 %v6181_v42  ;;  %v6178_v42 = vld [vmem:[#allocation5 + $0xe0] ss:$28 sps:$4 sm:$0xff]  }
 0x25f   : > { %4505 = vmatprep.subr.bf16.mxu0 %v6189_v43  ;;  %v6186_v43 = vld [vmem:[#allocation5 + $0x11c] ss:$28 sps:$4 sm:$0xff]  }
 0x262   : > { %4506 = vmatpush1.bf16.msra.mxu0 %v6187_v44  ;;  %v6184_v44 = vld [vmem:[#allocation5 + $0x118] ss:$28 sps:$4 sm:$0xff]  }
 0x263   : > { %4507 = vmatprep.subr.bf16.mxu0 %v6195_v45  ;;  %v6192_v45 = vld [vmem:[#allocation5 + $0x154] ss:$28 sps:$4 sm:$0xff]  }
 0x266   : > { %4508 = vmatpush1.bf16.msra.mxu0 %v6193_v46  ;;  %v6190_v46 = vld [vmem:[#allocation5 + $0x150] ss:$28 sps:$4 sm:$0xff]  }
 0x267   : > { %4509 = vmatprep.subr.bf16.mxu0 %v6201_v47  ;;  %v6198_v47 = vld [vmem:[#allocation5 + $0x18c] ss:$28 sps:$4 sm:$0xff]  }
 0x26a   : > { %4510 = vmatpush1.bf16.msra.mxu0 %v6199_v48  ;;  %v6196_v48 = vld [vmem:[#allocation5 + $0x188] ss:$28 sps:$4 sm:$0xff]  }
 0x26b   : > { %4511 = vmatprep.subr.bf16.mxu0 %v6207_v49  ;;  %v6204_v49 = vld [vmem:[#allocation5 + $0x1c4] ss:$28 sps:$4 sm:$0xff]  }
 0x26e   : > { %4512 = vmatpush1.bf16.msra.mxu0 %v6205_v50  ;;  %v6202_v50 = vld [vmem:[#allocation5 + $0x1c0] ss:$28 sps:$4 sm:$0xff]  }
 0x26f   : > { %4513 = vmatprep.subr.bf16.mxu0 %v6213_v51  ;;  %v6210_v51 = vld [vmem:[#allocation5 + $0x1fc] ss:$28 sps:$4 sm:$0xff]  }
 0x272   : > { %4514 = vmatpush1.bf16.msra.mxu0 %v6211_v52  ;;  %v6208_v52 = vld [vmem:[#allocation5 + $0x1f8] ss:$28 sps:$4 sm:$0xff]  }
 0x273   : > { %4515 = vmatprep.subr.bf16.mxu0 %v6219_v53  ;;  %v6216_v53 = vld [vmem:[#allocation5 + $0x234] ss:$28 sps:$4 sm:$0xff]  }
 0x276   : > { %4516 = vmatpush1.bf16.msra.mxu0 %v6217_v54  ;;  %v6214_v54 = vld [vmem:[#allocation5 + $0x230] ss:$28 sps:$4 sm:$0xff]  }
 0x277   : > { %4517 = vmatprep.subr.bf16.mxu0 %v6225_v55  ;;  %v6222_v55 = vld [vmem:[#allocation5 + $0x26c] ss:$28 sps:$4 sm:$0xff]  }
 0x27a   : > { %4518 = vmatpush1.bf16.msra.mxu0 %v6223_v56  ;;  %v6220_v56 = vld [vmem:[#allocation5 + $0x268] ss:$28 sps:$4 sm:$0xff]  }
 0x27b   : > { %4519 = vmatprep.subr.bf16.mxu0 %v6231_v57  ;;  %v6228_v57 = vld [vmem:[#allocation5 + $0x2a4] ss:$28 sps:$4 sm:$0xff]  }
 0x27e   : > { %4520 = vmatpush1.bf16.msra.mxu0 %v6229_v58  ;;  %v6226_v58 = vld [vmem:[#allocation5 + $0x2a0] ss:$28 sps:$4 sm:$0xff]  }
 0x27f   : > { %4521 = vmatprep.subr.bf16.mxu0 %v6237_v59  ;;  %v6234_v59 = vld [vmem:[#allocation5 + $0x2dc] ss:$28 sps:$4 sm:$0xff]  }
 0x282   : > { %4522 = vmatpush1.bf16.msra.mxu0 %v6235_v60  ;;  %v6232_v60 = vld [vmem:[#allocation5 + $0x2d8] ss:$28 sps:$4 sm:$0xff]  }
 0x320   : > { %v2648_v0 = vpop.f32.mrb[4].mxu0 }
 0x321   : > { %v5551_v1 = vadd.f32 %v2648_v0, %v2246_v62  ;;  %v2650_v2 = vpop.f32.mrb[5].mxu0  ;;  %v6243_v62 = vld [vmem:[#allocation5 + $0x31c] ss:$28 sps:$4 sm:$0xff]   ;;  %v6238_v0 = vld [vmem:[#allocation5 + $0x310] ss:$28 sps:$4 sm:$0xff]  }
 0x322   : > { %v5552_v3 = vadd.f32 %v2650_v2, %v2250_v63  ;;  %v2652_v5 = vpop.f32.mrb[6].mxu0  ;;  %v6241_v63 = vld [vmem:[#allocation5 + $0x318] ss:$28 sps:$4 sm:$0xff]   ;;  %4523 = vmatprep.subr.bf16.mxu0 %v6243_v62  ;;  %v6303_v62 = vld [vmem:[#allocation5 + $0x54c] ss:$28 sps:$4 sm:$0xff]  }
 0x323   : > { %2655 = vst [vmem:[%s444_s24] sm:$0xff] %v5551_v1  ;;  %v2653_v6 = vpop.f32.mrb[7].mxu0  ;;  %4524 = vmatpush1.bf16.msra.mxu0 %v6241_v63  ;;  %v6249_v2 = vld [vmem:[#allocation5 + $0x354] ss:$28 sps:$4 sm:$0xff]   ;;  %v6244_v5 = vld [vmem:[#allocation5 + $0x348] ss:$28 sps:$4 sm:$0xff]  }
 0x324   : > { %2656 = vst [vmem:[%s444_s24 + $0x8] sm:$0xff] %v5552_v3  ;;  %v2658_v7 = vmul.f32 0.5, %v5552_v3  ;;  %v6247_v3 = vld [vmem:[#allocation5 + $0x350] ss:$28 sps:$4 sm:$0xff]   ;;  %4525 = vmatprep.subr.bf16.mxu0 %v6249_v2  ;;  %v6252_v6 = vld [vmem:[#allocation5 + $0x384] ss:$28 sps:$4 sm:$0xff]  }
 0x325   : > { %v6301_v2 = vld [vmem:[#allocation5 + $0x548] ss:$28 sps:$4 sm:$0xff]  }
 0x326   : > { %v2659_v8 = vmul.f32 1.442695, %v2658_v7  ;;  %v6255_v7 = vld [vmem:[#allocation5 + $0x38c] ss:$28 sps:$4 sm:$0xff]  }
 0x327   : > { %4526 = vmatpush1.bf16.msra.mxu0 %v6247_v3  ;;  %v6306_v3 = vld [vmem:[#allocation5 + $0x57c] ss:$28 sps:$4 sm:$0xff]  }
 0x328   : > { %6474 = vpow2.f32 %v2659_v8  ;;  %4536 = vmatprep.subr.bf16.mxu0 %v6255_v7  ;;  %v7184_v8 = vld [vmem:[%s7308_s7] sm:$0xf] }
 0x329   : > { %v6307_v7 = vld [vmem:[#allocation5 + $0x580] ss:$28 sps:$4 sm:$0xff]  }
 0x332   : > { %v6475_v10 = vpop.eup %6474 }
 0x333   : > { %v2661_v12 = vmul.f32 %v6475_v10, %v2657_v9  ;;  %v2701_v9 = vrot.slane %v7184_v8, %v6963_v19  ;;  %v2705_v10 = vrot.slane %v7184_v8, %v6971_v21 }
 0x335   : > { %v2662_v13 = vadd.f32 %v5551_v1, %v2661_v12  ;;  %v6246_v1 = vld [vmem:[#allocation5 + $0x34c] ss:$28 sps:$4 sm:$0xff]  }
 0x337   : > { %v2663_v15 = vpack.c.bf16 %v2662_v13, %v2662_v13 }
 0x339   : > { %2911 = vmatmul.mubr.bf16.vlgmr.msra.gmra.mrb[4].mxu1 %v2663_v15 }
 0x33a   : > { %2920 = vmatpush1.bf16.msra.mxu1 %v6130_v14  ;;  %2951 = vmatprep.mubr.bf16.mxu1 %v6638_v22  ;;  %v6139_v22 = vld [vmem:[%s7307_s6 + $0x68] ss:$16 sps:$4 sm:$0xff]  }
 0x33b   : > { %2921 = vmatprep.subr.bf16.mxu1 %v6135_v16 }
 0x33e   : > { %2922 = vmatpush1.bf16.msra.mxu1 %v6133_v17 }
 0x33f   : > { %2923 = vmatprep.subr.bf16.mxu1 %v6138_v20 }
 0x342   : > { %2924 = vmatpush1.bf16.msra.mxu1 %v6136_v23 }
 0x343   : > { %2925 = vmatprep.subr.bf16.mxu1 %v6141_v24 }
 0x346   : > { %2926 = vmatpush1.bf16.msra.mxu1 %v6139_v22  ;;  %v6250_v22 = vld [vmem:[#allocation5 + $0x380] ss:$28 sps:$4 sm:$0xff]  }
 0x347   : > { %2927 = vmatprep.subr.bf16.mxu1 %v6144_v25  ;;  %v6253_v25 = vld [vmem:[#allocation5 + $0x388] ss:$28 sps:$4 sm:$0xff]  }
 0x34a   : > { %2928 = vmatpush1.bf16.msra.mxu1 %v6142_v26 }
 0x34b   : > { %2929 = vmatprep.subr.bf16.mxu1 %v6147_v27  ;;  %v6258_v27 = vld [vmem:[#allocation5 + $0x3bc] ss:$28 sps:$4 sm:$0xff]  }
 0x34e   : > { %2930 = vmatpush1.bf16.msra.mxu1 %v6145_v28  ;;  %v6261_v28 = vld [vmem:[#allocation5 + $0x3c4] ss:$28 sps:$4 sm:$0xff]  }
 0x34f   : > { %2931 = vmatprep.subr.bf16.mxu1 %v6150_v29  ;;  %v6256_v29 = vld [vmem:[#allocation5 + $0x3b8] ss:$28 sps:$4 sm:$0xff]  }
 0x352   : > { %2932 = vmatpush1.bf16.msra.mxu1 %v6148_v30  ;;  %v6259_v30 = vld [vmem:[#allocation5 + $0x3c0] ss:$28 sps:$4 sm:$0xff]  }
 0x353   : > { %2933 = vmatprep.subr.bf16.mxu1 %v6153_v31  ;;  %v6264_v31 = vld [vmem:[#allocation5 + $0x3f4] ss:$28 sps:$4 sm:$0xff]  }
 0x356   : > { %2934 = vmatpush1.bf16.msra.mxu1 %v6151_v32  ;;  %v6267_v32 = vld [vmem:[#allocation5 + $0x3fc] ss:$28 sps:$4 sm:$0xff]  }
 0x357   : > { %4413 = vmatprep.subr.bf16.mxu1 %v6156_v33  ;;  %v6262_v33 = vld [vmem:[#allocation5 + $0x3f0] ss:$28 sps:$4 sm:$0xff]  }
 0x359   : > { %2952 = vmatmul.mubr.bf16.vlgmr.msra.gmra.mrb[8].mxu1 %v2663_v15 }
 0x35a   : > { %4414 = vmatpush1.bf16.msra.mxu1 %v6154_v34  ;;  %v6265_v34 = vld [vmem:[#allocation5 + $0x3f8] ss:$28 sps:$4 sm:$0xff]  }
 0x35b   : > { %4415 = vmatprep.subr.bf16.mxu1 %v6162_v35  ;;  %v6270_v35 = vld [vmem:[#allocation5 + $0x42c] ss:$28 sps:$4 sm:$0xff]  }
 0x35e   : > { %4416 = vmatpush1.bf16.msra.mxu1 %v6160_v36  ;;  %v6273_v36 = vld [vmem:[#allocation5 + $0x434] ss:$28 sps:$4 sm:$0xff]  }
 0x35f   : > { %4417 = vmatprep.subr.bf16.mxu1 %v6168_v37  ;;  %v6268_v37 = vld [vmem:[#allocation5 + $0x428] ss:$28 sps:$4 sm:$0xff]  }
 0x362   : > { %4418 = vmatpush1.bf16.msra.mxu1 %v6166_v38  ;;  %v6271_v38 = vld [vmem:[#allocation5 + $0x430] ss:$28 sps:$4 sm:$0xff]  }
 0x363   : > { %4419 = vmatprep.subr.bf16.mxu1 %v6174_v39  ;;  %v6276_v39 = vld [vmem:[#allocation5 + $0x464] ss:$28 sps:$4 sm:$0xff]  }
 0x366   : > { %4420 = vmatpush1.bf16.msra.mxu1 %v6172_v40  ;;  %v6279_v40 = vld [vmem:[#allocation5 + $0x46c] ss:$28 sps:$4 sm:$0xff]  }
 0x367   : > { %4421 = vmatprep.subr.bf16.mxu1 %v6180_v41  ;;  %v6274_v41 = vld [vmem:[#allocation5 + $0x460] ss:$28 sps:$4 sm:$0xff]  }
 0x36a   : > { %4422 = vmatpush1.bf16.msra.mxu1 %v6178_v42  ;;  %v6277_v42 = vld [vmem:[#allocation5 + $0x468] ss:$28 sps:$4 sm:$0xff]  }
 0x36b   : > { %4423 = vmatprep.subr.bf16.mxu1 %v6186_v43  ;;  %v6282_v43 = vld [vmem:[#allocation5 + $0x49c] ss:$28 sps:$4 sm:$0xff]  }
 0x36e   : > { %4424 = vmatpush1.bf16.msra.mxu1 %v6184_v44  ;;  %v6285_v44 = vld [vmem:[#allocation5 + $0x4a4] ss:$28 sps:$4 sm:$0xff]  }
 0x36f   : > { %4425 = vmatprep.subr.bf16.mxu1 %v6192_v45  ;;  %v6280_v45 = vld [vmem:[#allocation5 + $0x498] ss:$28 sps:$4 sm:$0xff]  }
 0x372   : > { %4426 = vmatpush1.bf16.msra.mxu1 %v6190_v46  ;;  %v6283_v46 = vld [vmem:[#allocation5 + $0x4a0] ss:$28 sps:$4 sm:$0xff]  }
 0x373   : > { %4427 = vmatprep.subr.bf16.mxu1 %v6198_v47  ;;  %v6288_v47 = vld [vmem:[#allocation5 + $0x4d4] ss:$28 sps:$4 sm:$0xff]  }
 0x376   : > { %4428 = vmatpush1.bf16.msra.mxu1 %v6196_v48  ;;  %v6291_v48 = vld [vmem:[#allocation5 + $0x4dc] ss:$28 sps:$4 sm:$0xff]  }
 0x377   : > { %4429 = vmatprep.subr.bf16.mxu1 %v6204_v49  ;;  %v2713_v49 = vrot.slane %v7184_v8, %v6974_v11 }
 0x37a   : > { %4430 = vmatpush1.bf16.msra.mxu1 %v6202_v50  ;;  %v6286_v50 = vld [vmem:[#allocation5 + $0x4d0] ss:$28 sps:$4 sm:$0xff]  }
 0x37b   : > { %4431 = vmatprep.subr.bf16.mxu1 %v6210_v51  ;;  %v6289_v51 = vld [vmem:[#allocation5 + $0x4d8] ss:$28 sps:$4 sm:$0xff]  }
 0x37e   : > { %4432 = vmatpush1.bf16.msra.mxu1 %v6208_v52  ;;  %v6294_v52 = vld [vmem:[#allocation5 + $0x50c] ss:$28 sps:$4 sm:$0xff]  }
 0x37f   : > { %4433 = vmatprep.subr.bf16.mxu1 %v6216_v53  ;;  %v6297_v53 = vld [vmem:[#allocation5 + $0x514] ss:$28 sps:$4 sm:$0xff]  }
 0x382   : > { %4434 = vmatpush1.bf16.msra.mxu1 %v6214_v54 }
 0x383   : > { %4435 = vmatprep.subr.bf16.mxu1 %v6222_v55 }
 0x386   : > { %4436 = vmatpush1.bf16.msra.mxu1 %v6220_v56 }
 0x387   : > { %4437 = vmatprep.subr.bf16.mxu1 %v6228_v57 }
 0x38a   : > { %4438 = vmatpush1.bf16.msra.mxu1 %v6226_v58  ;;  %v6292_v58 = vld [vmem:[#allocation5 + $0x508] ss:$28 sps:$4 sm:$0xff]  }
 0x38b   : > { %4439 = vmatprep.subr.bf16.mxu1 %v6234_v59  ;;  %v6295_v59 = vld [vmem:[#allocation5 + $0x510] ss:$28 sps:$4 sm:$0xff]  }
 0x38e   : > { %4440 = vmatpush1.bf16.msra.mxu1 %v6232_v60 }
 0x38f   : > { %4441 = vmatprep.subr.bf16.mxu1 %v6240_v61  ;;  %v6300_v61 = vld [vmem:[#allocation5 + $0x544] ss:$28 sps:$4 sm:$0xff]  }
 0x392   : > { %4442 = vmatpush1.bf16.msra.mxu1 %v6238_v0 }
 0x393   : > { %4443 = vmatprep.subr.bf16.mxu1 %v6246_v1  ;;  %v6298_v1 = vld [vmem:[#allocation5 + $0x540] ss:$28 sps:$4 sm:$0xff]  }
 0x396   : > { %4444 = vmatpush1.bf16.msra.mxu1 %v6244_v5  ;;  %v6309_v5 = vld [vmem:[#allocation5 + $0x584] ss:$28 sps:$4 sm:$0xff]  }
 0x397   : > { %4454 = vmatprep.subr.bf16.mxu1 %v6252_v6  ;;  %v6304_v6 = vld [vmem:[#allocation5 + $0x578] ss:$28 sps:$4 sm:$0xff]  }
 0x40c   : > { %v2912_v12 = vpop.f32.mrb[4].mxu1 }
 0x40d   : > { %v2913_v13 = vadd.f32 %v2912_v12, %v2701_v9  ;;  %v2914_v14 = vpop.f32.mrb[5].mxu1  ;;  %v6312_v9 = vld [vmem:[#allocation5 + $0x5b4] ss:$28 sps:$4 sm:$0xff]  }
 0x40e   : > { %v2915_v15 = vadd.f32 %v2914_v14, %v2705_v10  ;;  %v2916_v16 = vpop.f32.mrb[6].mxu1  ;;  %v6315_v10 = vld [vmem:[#allocation5 + $0x5bc] ss:$28 sps:$4 sm:$0xff]   ;;  %v6310_v12 = vld [vmem:[#allocation5 + $0x5b0] ss:$28 sps:$4 sm:$0xff]  }
 0x40f   : > { %v2960_v17 = vmax.f32 %v2913_v13, 0.0  ;;  %v2917_v20 = vpop.f32.mrb[7].mxu1  ;;  %v6313_v13 = vld [vmem:[#allocation5 + $0x5b8] ss:$28 sps:$4 sm:$0xff]   ;;  %v6318_v14 = vld [vmem:[#allocation5 + $0x5ec] ss:$28 sps:$4 sm:$0xff]  }
 0x410   : > { %v2961_v23 = vmax.f32 %v2915_v15, 0.0  ;;  %v6321_v15 = vld [vmem:[#allocation5 + $0x5f4] ss:$28 sps:$4 sm:$0xff]   ;;  %v6316_v16 = vld [vmem:[#allocation5 + $0x5e8] ss:$28 sps:$4 sm:$0xff]  }
 0x411   : > { %v7192_v26 = vpack.c.bf16 %v2960_v17, %v2960_v17  ;;  %v6319_v17 = vld [vmem:[#allocation5 + $0x5f0] ss:$28 sps:$4 sm:$0xff]   ;;  %v6324_v20 = vld [vmem:[#allocation5 + $0x624] ss:$28 sps:$4 sm:$0xff]  }
 0x412   : > { %v7190_v24 = vpack.c.bf16 %v2961_v23, %v2961_v23  ;;  %v6327_v23 = vld [vmem:[#allocation5 + $0x62c] ss:$28 sps:$4 sm:$0xff]  }
 0x414   : > { %4445 = vmatprep.mubr.bf16.mxu1 %v7190_v24  ;;  %4527 = vmatprep.mubr.bf16.mxu0 %v7190_v24 }
 0x415   : > { %4446 = vmatmul.mubr.bf16.vlgmr.msra.gmra.mrb[12].mxu1 %v7192_v26  ;;  %4528 = vmatmul.mubr.bf16.vlgmr.msra.gmra.mrb[8].mxu0 %v7192_v26 }
 0x416   : > { %4455 = vmatpush1.bf16.msra.mxu1 %v6250_v22  ;;  %4537 = vmatpush1.bf16.msra.mxu0 %v6253_v25  ;;  %v6322_v22 = vld [vmem:[#allocation5 + $0x620] ss:$28 sps:$4 sm:$0xff]   ;;  %v6325_v25 = vld [vmem:[#allocation5 + $0x628] ss:$28 sps:$4 sm:$0xff]  }
 0x417   : > { %4456 = vmatprep.subr.bf16.mxu1 %v6258_v27  ;;  %4538 = vmatprep.subr.bf16.mxu0 %v6261_v28  ;;  %v6330_v27 = vld [vmem:[#allocation5 + $0x65c] ss:$28 sps:$4 sm:$0xff]   ;;  %v6333_v28 = vld [vmem:[#allocation5 + $0x664] ss:$28 sps:$4 sm:$0xff]  }
 0x41a   : > { %4457 = vmatpush1.bf16.msra.mxu1 %v6256_v29  ;;  %4539 = vmatpush1.bf16.msra.mxu0 %v6259_v30  ;;  %v6328_v29 = vld [vmem:[#allocation5 + $0x658] ss:$28 sps:$4 sm:$0xff]   ;;  %v6331_v30 = vld [vmem:[#allocation5 + $0x660] ss:$28 sps:$4 sm:$0xff]  }
 0x41b   : > { %4458 = vmatprep.subr.bf16.mxu1 %v6264_v31  ;;  %4540 = vmatprep.subr.bf16.mxu0 %v6267_v32  ;;  %v2709_v31 = vrot.slane %v7184_v8, %v7060_v4  ;;  %v6336_v32 = vld [vmem:[#allocation5 + $0x694] ss:$28 sps:$4 sm:$0xff]  }
 0x41c   : > { %v6348_v8 = vld [vmem:[#allocation5 + $0x14] ss:$28 sps:$4 sm:$0xff]  }
 0x41e   : > { %4459 = vmatpush1.bf16.msra.mxu1 %v6262_v33  ;;  %4541 = vmatpush1.bf16.msra.mxu0 %v6265_v34  ;;  %v6339_v33 = vld [vmem:[#allocation5 + $0x69c] ss:$28 sps:$4 sm:$0xff]   ;;  %v6334_v34 = vld [vmem:[#allocation5 + $0x690] ss:$28 sps:$4 sm:$0xff]  }
 0x41f   : > { %4460 = vmatprep.subr.bf16.mxu1 %v6270_v35  ;;  %4542 = vmatprep.subr.bf16.mxu0 %v6273_v36  ;;  %v6337_v35 = vld [vmem:[#allocation5 + $0x698] ss:$28 sps:$4 sm:$0xff]  }
 0x422   : > { %4461 = vmatpush1.bf16.msra.mxu1 %v6268_v37  ;;  %4543 = vmatpush1.bf16.msra.mxu0 %v6271_v38  ;;  %v6342_v37 = vld [vmem:[#allocation5 + $0x6cc] ss:$28 sps:$4 sm:$0xff]   ;;  %v6345_v38 = vld [vmem:[#allocation5 + $0x6d4] ss:$28 sps:$4 sm:$0xff]  }
 0x423   : > { %4462 = vmatprep.subr.bf16.mxu1 %v6276_v39  ;;  %4544 = vmatprep.subr.bf16.mxu0 %v6279_v40  ;;  %v6340_v39 = vld [vmem:[#allocation5 + $0x6c8] ss:$28 sps:$4 sm:$0xff]   ;;  %v6343_v40 = vld [vmem:[#allocation5 + $0x6d0] ss:$28 sps:$4 sm:$0xff]  }
 0x426   : > { %4463 = vmatpush1.bf16.msra.mxu1 %v6274_v41  ;;  %4545 = vmatpush1.bf16.msra.mxu0 %v6277_v42  ;;  %v6349_v42 = vld [vmem:[#allocation5 + $0x1d8] ss:$28 sps:$4 sm:$0xff]  }
 0x427   : > { %4464 = vmatprep.subr.bf16.mxu1 %v6282_v43  ;;  %4546 = vmatprep.subr.bf16.mxu0 %v6285_v44  ;;  %v6346_v43 = vld [vmem:[#allocation5 + $0x10] ss:$28 sps:$4 sm:$0xff]  }
 0x42a   : > { %4465 = vmatpush1.bf16.msra.mxu1 %v6280_v45  ;;  %4547 = vmatpush1.bf16.msra.mxu0 %v6283_v46  ;;  %v6350_v45 = vld [vmem:[#allocation5 + $0x18] ss:$28 sps:$4 sm:$0xff]   ;;  %v6353_v46 = vld [vmem:[#allocation5 + $0x4c] ss:$28 sps:$4 sm:$0xff]  }
 0x42b   : > { %4466 = vmatprep.subr.bf16.mxu1 %v6288_v47  ;;  %4548 = vmatprep.subr.bf16.mxu0 %v6291_v48  ;;  %v6354_v47 = vld [vmem:[#allocation5 + $0x210] ss:$28 sps:$4 sm:$0xff]   ;;  %v6351_v48 = vld [vmem:[#allocation5 + $0x48] ss:$28 sps:$4 sm:$0xff]  }
 0x42c   : > { %v7200_v54 = vpop.f32.mrb[8].mxu1 }
 0x42d   : > { %v2955_v55 = vpop.f32.mrb[9].mxu1  ;;  %v2954_v36 = vadd.f32 %v7200_v54, %v2709_v31  ;;  %v6363_v54 = vld [vmem:[#allocation5 + $0xbc] ss:$28 sps:$4 sm:$0xff]  }
 0x42e   : > { %v2956_v56 = vadd.f32 %v2955_v55, %v2713_v49  ;;  %v2957_v57 = vpop.f32.mrb[10].mxu1  ;;  %4467 = vmatpush1.bf16.msra.mxu1 %v6286_v50  ;;  %4549 = vmatpush1.bf16.msra.mxu0 %v6289_v51  ;;  %v6355_v49 = vld [vmem:[#allocation5 + $0x50] ss:$28 sps:$4 sm:$0xff]   ;;  %v6358_v50 = vld [vmem:[#allocation5 + $0x84] ss:$28 sps:$4 sm:$0xff]  }
 0x42f   : > { %v2958_v60 = vpop.f32.mrb[11].mxu1  ;;  %4468 = vmatprep.subr.bf16.mxu1 %v6294_v52  ;;  %4550 = vmatprep.subr.bf16.mxu0 %v6297_v53  ;;  %v2962_v41 = vmax.f32 %v2954_v36, 0.0  ;;  %v6359_v51 = vld [vmem:[#allocation5 + $0x248] ss:$28 sps:$4 sm:$0xff]   ;;  %v6356_v52 = vld [vmem:[#allocation5 + $0x80] ss:$28 sps:$4 sm:$0xff]  }
 0x430   : > { %v2963_v63 = vmax.f32 %v2956_v56, 0.0  ;;  %v6360_v53 = vld [vmem:[#allocation5 + $0x88] ss:$28 sps:$4 sm:$0xff]   ;;  %v6364_v55 = vld [vmem:[#allocation5 + $0x280] ss:$28 sps:$4 sm:$0xff]  }
 0x431   : > { %v7209_v44 = vpack.c.bf16 %v2962_v41, %v2962_v41  ;;  %v6361_v56 = vld [vmem:[#allocation5 + $0xb8] ss:$28 sps:$4 sm:$0xff]   ;;  %v6365_v57 = vld [vmem:[#allocation5 + $0xc0] ss:$28 sps:$4 sm:$0xff]   ;;  %v6406_v36 = vld [vmem:[#allocation5 + $0x2b0] ss:$28 sps:$4 sm:$0xff]  }
 0x432   : > { %v7202_v0 = vpack.c.bf16 %v2963_v63, %v2963_v63  ;;  %4469 = vmatpush1.bf16.msra.mxu1 %v6292_v58  ;;  %4551 = vmatpush1.bf16.msra.mxu0 %v6295_v59  ;;  %v6368_v58 = vld [vmem:[#allocation5 + $0xf4] ss:$28 sps:$4 sm:$0xff]   ;;  %v6371_v63 = vld [vmem:[#allocation5 + $0x128] ss:$28 sps:$4 sm:$0xff]   ;;  %v6404_v31 = vld [vmem:[#allocation5 + $0x600] ss:$28 sps:$4 sm:$0xff]  }
 0x433   : > { %4470 = vmatprep.subr.bf16.mxu1 %v6300_v61  ;;  %4552 = vmatprep.subr.bf16.mxu0 %v6303_v62  ;;  %v6366_v59 = vld [vmem:[#allocation5 + $0xf0] ss:$28 sps:$4 sm:$0xff]   ;;  %v6370_v60 = vld [vmem:[#allocation5 + $0xf8] ss:$28 sps:$4 sm:$0xff]  }
 0x434   : > { %4486 = vmatprep.mubr.bf16.mxu1 %v7202_v0  ;;  %4568 = vmatprep.mubr.bf16.mxu0 %v7202_v0  ;;  %v6373_v61 = vld [vmem:[#allocation5 + $0x12c] ss:$28 sps:$4 sm:$0xff]  }
 0x435   : > { %v6374_v62 = vld [vmem:[#allocation5 + $0x2f0] ss:$28 sps:$4 sm:$0xff]  }
 0x436   : > { %4471 = vmatpush1.bf16.msra.mxu1 %v6298_v1  ;;  %4553 = vmatpush1.bf16.msra.mxu0 %v6301_v2  ;;  %v6375_v1 = vld [vmem:[#allocation5 + $0x130] ss:$28 sps:$4 sm:$0xff]   ;;  %v6378_v2 = vld [vmem:[#allocation5 + $0x164] ss:$28 sps:$4 sm:$0xff]  }
 0x437   : > { %4472 = vmatprep.subr.bf16.mxu1 %v6306_v3  ;;  %4554 = vmatprep.subr.bf16.mxu0 %v6309_v5  ;;  %v6379_v3 = vld [vmem:[#allocation5 + $0x328] ss:$28 sps:$4 sm:$0xff]   ;;  %v6376_v5 = vld [vmem:[#allocation5 + $0x160] ss:$28 sps:$4 sm:$0xff]   ;;  %v6415_v41 = vld [vmem:[#allocation5 + $0x4b0] ss:$28 sps:$4 sm:$0xff]  }
 0x43a   : > { %4473 = vmatpush1.bf16.msra.mxu1 %v6304_v6  ;;  %4555 = vmatpush1.bf16.msra.mxu0 %v6307_v7  ;;  %v6380_v6 = vld [vmem:[#allocation5 + $0x168] ss:$28 sps:$4 sm:$0xff]   ;;  %v6383_v7 = vld [vmem:[#allocation5 + $0x19c] ss:$28 sps:$4 sm:$0xff]  }
 0x43b   : > { %4474 = vmatprep.subr.bf16.mxu1 %v6312_v9  ;;  %4556 = vmatprep.subr.bf16.mxu0 %v6315_v10  ;;  %v6384_v9 = vld [vmem:[#allocation5 + $0x360] ss:$28 sps:$4 sm:$0xff]   ;;  %v6381_v10 = vld [vmem:[#allocation5 + $0x198] ss:$28 sps:$4 sm:$0xff]  }
 0x43e   : > { %4475 = vmatpush1.bf16.msra.mxu1 %v6310_v12  ;;  %4557 = vmatpush1.bf16.msra.mxu0 %v6313_v13  ;;  %v6385_v12 = vld [vmem:[#allocation5 + $0x1a0] ss:$28 sps:$4 sm:$0xff]   ;;  %v6388_v13 = vld [vmem:[#allocation5 + $0x1d4] ss:$28 sps:$4 sm:$0xff]  }
 0x43f   : > { %4476 = vmatprep.subr.bf16.mxu1 %v6318_v14  ;;  %4558 = vmatprep.subr.bf16.mxu0 %v6321_v15  ;;  %v6389_v14 = vld [vmem:[#allocation5 + $0x558] ss:$28 sps:$4 sm:$0xff]   ;;  %v6386_v15 = vld [vmem:[#allocation5 + $0x1d0] ss:$28 sps:$4 sm:$0xff]  }
 0x442   : > { %4477 = vmatpush1.bf16.msra.mxu1 %v6316_v16  ;;  %4559 = vmatpush1.bf16.msra.mxu0 %v6319_v17  ;;  %v6390_v16 = vld [vmem:[#allocation5 + $0x398] ss:$28 sps:$4 sm:$0xff]   ;;  %v6393_v17 = vld [vmem:[#allocation5 + $0x20c] ss:$28 sps:$4 sm:$0xff]  }
 0x443   : > { %4478 = vmatprep.subr.bf16.mxu1 %v6324_v20  ;;  %4560 = vmatprep.subr.bf16.mxu0 %v6327_v23  ;;  %v6394_v20 = vld [vmem:[#allocation5 + $0x590] ss:$28 sps:$4 sm:$0xff]   ;;  %v6391_v23 = vld [vmem:[#allocation5 + $0x208] ss:$28 sps:$4 sm:$0xff]  }
 0x446   : > { %4479 = vmatpush1.bf16.msra.mxu1 %v6322_v22  ;;  %4561 = vmatpush1.bf16.msra.mxu0 %v6325_v25  ;;  %v6395_v22 = vld [vmem:[#allocation5 + $0x3d0] ss:$28 sps:$4 sm:$0xff]   ;;  %v6398_v25 = vld [vmem:[#allocation5 + $0x244] ss:$28 sps:$4 sm:$0xff]  }
 0x447   : > { %4480 = vmatprep.subr.bf16.mxu1 %v6330_v27  ;;  %4562 = vmatprep.subr.bf16.mxu0 %v6333_v28  ;;  %v6399_v27 = vld [vmem:[#allocation5 + $0x5c8] ss:$28 sps:$4 sm:$0xff]   ;;  %v6396_v28 = vld [vmem:[#allocation5 + $0x240] ss:$28 sps:$4 sm:$0xff]  }
 0x44a   : > { %4481 = vmatpush1.bf16.msra.mxu1 %v6328_v29  ;;  %4563 = vmatpush1.bf16.msra.mxu0 %v6331_v30  ;;  %v6400_v29 = vld [vmem:[#allocation5 + $0x408] ss:$28 sps:$4 sm:$0xff]   ;;  %v6403_v30 = vld [vmem:[#allocation5 + $0x27c] ss:$28 sps:$4 sm:$0xff]  }
 0x44b   : > { %4482 = vmatprep.subr.bf16.mxu1 %v6336_v32  ;;  %4564 = vmatprep.subr.bf16.mxu0 %v6339_v33  ;;  %v6401_v32 = vld [vmem:[#allocation5 + $0x278] ss:$28 sps:$4 sm:$0xff]   ;;  %v6405_v33 = vld [vmem:[#allocation5 + $0x440] ss:$28 sps:$4 sm:$0xff]  }
 0x44e   : > { %4483 = vmatpush1.bf16.msra.mxu1 %v6334_v34  ;;  %4565 = vmatpush1.bf16.msra.mxu0 %v6337_v35  ;;  %v6408_v34 = vld [vmem:[#allocation5 + $0x2b4] ss:$28 sps:$4 sm:$0xff]  }
 0x44f   : > { %4484 = vmatprep.subr.bf16.mxu1 %v6342_v37  ;;  %4566 = vmatprep.subr.bf16.mxu0 %v6345_v38  ;;  %v6409_v35 = vld [vmem:[#allocation5 + $0x638] ss:$28 sps:$4 sm:$0xff]   ;;  %v6413_v38 = vld [vmem:[#allocation5 + $0x2ec] ss:$28 sps:$4 sm:$0xff]  }
 0x450   : > { %v6410_v37 = vld [vmem:[#allocation5 + $0x478] ss:$28 sps:$4 sm:$0xff]  }
 0x452   : > { %4485 = vmatpush1.bf16.msra.mxu1 %v6340_v39  ;;  %4567 = vmatpush1.bf16.msra.mxu0 %v6343_v40  ;;  %v6414_v39 = vld [vmem:[#allocation5 + $0x670] ss:$28 sps:$4 sm:$0xff]   ;;  %v6411_v40 = vld [vmem:[#allocation5 + $0x2e8] ss:$28 sps:$4 sm:$0xff]  }
 0x453   : > { %4577 = vmatprep.subr.bf16.mxu1 %v6348_v8  ;;  %5503 = vmatprep.subr.bf16.mxu0 %v6349_v42  ;;  %v6418_v8 = vld [vmem:[#allocation5 + $0x324] ss:$28 sps:$4 sm:$0xff]  }
 0x454   : > { %v6419_v42 = vld [vmem:[#allocation5 + $0x6a8] ss:$28 sps:$4 sm:$0xff]  }
 0x455   : > { %4487 = vmatmul.mubr.bf16.vlgmr.msra.gmra.mrb[12].mxu1 %v7209_v44  ;;  %4569 = vmatmul.mubr.bf16.vlgmr.msra.gmra.mrb[8].mxu0 %v7209_v44 }
 0x456   : > { %4578 = vmatpush1.bf16.msra.mxu1 %v6346_v43  ;;  %4609 = vmatprep.mubr.bf16.mxu1 %v7190_v24  ;;  %v6416_v43 = vld [vmem:[#allocation5 + $0x320] ss:$28 sps:$4 sm:$0xff]  }
 0x457   : > { %5504 = vmatpush3.bf16.msra.mxu0 %v6350_v45  ;;  %4691 = vmatprep.mubr.bf16.mxu0 %v7190_v24  ;;  %v6369_v24 = vld [vmem:[#allocation5 + $0x2b8] ss:$28 sps:$4 sm:$0xff]   ;;  %v6420_v45 = vld [vmem:[#allocation5 + $0x4e8] ss:$28 sps:$4 sm:$0xff]  }
 0x458   : > { %4579 = vmatprep.subr.bf16.mxu1 %v6353_v46  ;;  %5505 = vmatprep.subr.bf16.mxu0 %v6354_v47  ;;  %v6423_v46 = vld [vmem:[#allocation5 + $0x35c] ss:$28 sps:$4 sm:$0xff]  }
 0x459   : > { %v6424_v47 = vld [vmem:[#allocation5 + $0x6e0] ss:$28 sps:$4 sm:$0xff]  }
 0x45a   : > { %4580 = vmatpush1.bf16.msra.mxu1 %v6351_v48  ;;  %v6421_v48 = vld [vmem:[#allocation5 + $0x358] ss:$28 sps:$4 sm:$0xff]  }
 0x45b   : > { %5506 = vmatpush3.bf16.msra.mxu0 %v6355_v49  ;;  %4581 = vmatprep.subr.bf16.mxu1 %v6358_v50  ;;  %v6425_v49 = vld [vmem:[#allocation5 + $0x520] ss:$28 sps:$4 sm:$0xff]   ;;  %v6428_v50 = vld [vmem:[#allocation5 + $0x394] ss:$28 sps:$4 sm:$0xff]  }
 0x45c   : > { %5507 = vmatprep.subr.bf16.mxu0 %v6359_v51  ;;  %v6426_v51 = vld [vmem:[#allocation5 + $0x390] ss:$28 sps:$4 sm:$0xff]  }
 0x45e   : > { %4582 = vmatpush1.bf16.msra.mxu1 %v6356_v52  ;;  %v6431_v52 = vld [vmem:[#allocation5 + $0x3cc] ss:$28 sps:$4 sm:$0xff]  }
 0x45f   : > { %5508 = vmatpush3.bf16.msra.mxu0 %v6360_v53  ;;  %4583 = vmatprep.subr.bf16.mxu1 %v6363_v54  ;;  %v6429_v53 = vld [vmem:[#allocation5 + $0x3c8] ss:$28 sps:$4 sm:$0xff]  }
 0x460   : > { %5509 = vmatprep.subr.bf16.mxu0 %v6364_v55  ;;  %v6434_v54 = vld [vmem:[#allocation5 + $0x404] ss:$28 sps:$4 sm:$0xff]  }
 0x461   : > { %v6432_v55 = vld [vmem:[#allocation5 + $0x400] ss:$28 sps:$4 sm:$0xff]  }
 0x462   : > { %4584 = vmatpush1.bf16.msra.mxu1 %v6361_v56  ;;  %v6437_v56 = vld [vmem:[#allocation5 + $0x43c] ss:$28 sps:$4 sm:$0xff]  }
 0x463   : > { %5510 = vmatpush3.bf16.msra.mxu0 %v6365_v57  ;;  %4585 = vmatprep.subr.bf16.mxu1 %v6368_v58  ;;  %v6435_v57 = vld [vmem:[#allocation5 + $0x438] ss:$28 sps:$4 sm:$0xff]  }
 0x464   : > { %5511 = vmatprep.subr.bf16.mxu0 %v6369_v24  ;;  %v6440_v58 = vld [vmem:[#allocation5 + $0x474] ss:$28 sps:$4 sm:$0xff]  }
 0x465   : > { %v6438_v24 = vld [vmem:[#allocation5 + $0x470] ss:$28 sps:$4 sm:$0xff]  }
 0x466   : > { %4586 = vmatpush1.bf16.msra.mxu1 %v6366_v59  ;;  %v6441_v59 = vld [vmem:[#allocation5 + $0x4a8] ss:$28 sps:$4 sm:$0xff]  }
 0x467   : > { %5512 = vmatpush3.bf16.msra.mxu0 %v6370_v60  ;;  %4587 = vmatprep.subr.bf16.mxu1 %v6373_v61  ;;  %v6446_v60 = vld [vmem:[#allocation5 + $0x4e4] ss:$28 sps:$4 sm:$0xff]   ;;  %v6449_v61 = vld [vmem:[#allocation5 + $0x51c] ss:$28 sps:$4 sm:$0xff]  }
 0x468   : > { %5513 = vmatprep.subr.bf16.mxu0 %v6374_v62  ;;  %v6447_v62 = vld [vmem:[#allocation5 + $0x518] ss:$28 sps:$4 sm:$0xff]  }
 0x46a   : > { %4588 = vmatpush1.bf16.msra.mxu1 %v6371_v63  ;;  %v6452_v63 = vld [vmem:[#allocation5 + $0x554] ss:$28 sps:$4 sm:$0xff]  }
 0x46b   : > { %5514 = vmatpush3.bf16.msra.mxu0 %v6375_v1  ;;  %4589 = vmatprep.subr.bf16.mxu1 %v6378_v2  ;;  %v6450_v1 = vld [vmem:[#allocation5 + $0x550] ss:$28 sps:$4 sm:$0xff]  }
 0x46c   : > { %5515 = vmatprep.subr.bf16.mxu0 %v6379_v3  ;;  %v6455_v2 = vld [vmem:[#allocation5 + $0x58c] ss:$28 sps:$4 sm:$0xff]  }
 0x46d   : > { %v6453_v3 = vld [vmem:[#allocation5 + $0x588] ss:$28 sps:$4 sm:$0xff]  }
 0x46e   : > { %4590 = vmatpush1.bf16.msra.mxu1 %v6376_v5  ;;  %v6458_v5 = vld [vmem:[#allocation5 + $0x5c4] ss:$28 sps:$4 sm:$0xff]  }
 0x46f   : > { %5516 = vmatpush3.bf16.msra.mxu0 %v6380_v6  ;;  %4591 = vmatprep.subr.bf16.mxu1 %v6383_v7  ;;  %v6456_v6 = vld [vmem:[#allocation5 + $0x5c0] ss:$28 sps:$4 sm:$0xff]  }
 0x470   : > { %5517 = vmatprep.subr.bf16.mxu0 %v6384_v9  ;;  %v6461_v7 = vld [vmem:[#allocation5 + $0x5fc] ss:$28 sps:$4 sm:$0xff]  }
 0x471   : > { %v6459_v9 = vld [vmem:[#allocation5 + $0x5f8] ss:$28 sps:$4 sm:$0xff]  }
 0x472   : > { %4592 = vmatpush1.bf16.msra.mxu1 %v6381_v10  ;;  %v6464_v10 = vld [vmem:[#allocation5 + $0x634] ss:$28 sps:$4 sm:$0xff]  }
 0x473   : > { %5518 = vmatpush3.bf16.msra.mxu0 %v6385_v12  ;;  %4593 = vmatprep.subr.bf16.mxu1 %v6388_v13  ;;  %v6462_v12 = vld [vmem:[#allocation5 + $0x630] ss:$28 sps:$4 sm:$0xff]  }
 0x474   : > { %5525 = vmatprep.subr.bf16.mxu0 %v6389_v14  ;;  %v6467_v13 = vld [vmem:[#allocation5 + $0x66c] ss:$28 sps:$4 sm:$0xff]  }
 0x475   : > { %v6465_v14 = vld [vmem:[#allocation5 + $0x668] ss:$28 sps:$4 sm:$0xff]  }
 0x476   : > { %4692 = vmatmul.mubr.bf16.vlgmr.msra.gmra.mrb[12].mxu0 %v7192_v26  ;;  %4594 = vmatpush1.bf16.msra.mxu1 %v6386_v15  ;;  %v6470_v15 = vld [vmem:[#allocation5 + $0x6a4] ss:$28 sps:$4 sm:$0xff]  }
 0x477   : > { %5526 = vmatpush3.bf16.msra.mxu0 %v6390_v16  ;;  %4731 = vmatprep.mubr.bf16.mxu0 %v7202_v0  ;;  %v6468_v16 = vld [vmem:[#allocation5 + $0x6a0] ss:$28 sps:$4 sm:$0xff]  }
 0x478   : > { %4595 = vmatprep.subr.bf16.mxu1 %v6393_v17  ;;  %5527 = vmatprep.subr.bf16.mxu0 %v6394_v20  ;;  %v6473_v17 = vld [vmem:[#allocation5 + $0x6dc] ss:$28 sps:$4 sm:$0xff]  }
 0x479   : > { %v6471_v20 = vld [vmem:[#allocation5 + $0x6d8] ss:$28 sps:$4 sm:$0xff]  }
 0x47a   : > { %4596 = vmatpush1.bf16.msra.mxu1 %v6391_v23  ;;  %v7224_v23 = vld [vmem:[%s7310_s9] sm:$0xff] }
 0x47b   : > { %5528 = vmatpush3.bf16.msra.mxu0 %v6395_v22  ;;  %4597 = vmatprep.subr.bf16.mxu1 %v6398_v25  ;;  %v3229_v22 = vrot.slane %v7224_v23, %v6963_v19  ;;  %v3237_v25 = vrot.slane %v7224_v23, %v7060_v4 }
 0x47c   : > { %5529 = vmatprep.subr.bf16.mxu0 %v6399_v27  ;;  %v3233_v27 = vrot.slane %v7224_v23, %v6971_v21 }
 0x47e   : > { %4598 = vmatpush1.bf16.msra.mxu1 %v6396_v28  ;;  %v3241_v28 = vrot.slane %v7224_v23, %v6974_v11 }
 0x47f   : > { %5530 = vmatpush3.bf16.msra.mxu0 %v6400_v29  ;;  %4599 = vmatprep.subr.bf16.mxu1 %v6403_v30 }
 0x480   : > { %5531 = vmatprep.subr.bf16.mxu0 %v6404_v31 }
 0x482   : > { %4600 = vmatpush1.bf16.msra.mxu1 %v6401_v32 }
 0x483   : > { %5532 = vmatpush3.bf16.msra.mxu0 %v6405_v33  ;;  %4601 = vmatprep.subr.bf16.mxu1 %v6408_v34 }
 0x484   : > { %5533 = vmatprep.subr.bf16.mxu0 %v6409_v35 }
 0x486   : > { %4602 = vmatpush1.bf16.msra.mxu1 %v6406_v36 }
 0x487   : > { %5534 = vmatpush3.bf16.msra.mxu0 %v6410_v37  ;;  %4603 = vmatprep.subr.bf16.mxu1 %v6413_v38 }
 0x488   : > { %5535 = vmatprep.subr.bf16.mxu0 %v6414_v39 }
 0x48a   : > { %4604 = vmatpush1.bf16.msra.mxu1 %v6411_v40 }
 0x48b   : > { %5536 = vmatpush3.bf16.msra.mxu0 %v6415_v41  ;;  %4605 = vmatprep.subr.bf16.mxu1 %v6418_v8 }
 0x48c   : > { %5537 = vmatprep.subr.bf16.mxu0 %v6419_v42 }
 0x48e   : > { %4606 = vmatpush1.bf16.msra.mxu1 %v6416_v43 }
 0x48f   : > { %5538 = vmatpush3.bf16.msra.mxu0 %v6420_v45  ;;  %4607 = vmatprep.subr.bf16.mxu1 %v6423_v46 }
 0x490   : > { %5539 = vmatprep.subr.bf16.mxu0 %v6424_v47 }
 0x492   : > { %4608 = vmatpush1.bf16.msra.mxu1 %v6421_v48 }
 0x493   : > { %5540 = vmatpush3.bf16.msra.mxu0 %v6425_v49  ;;  %4618 = vmatprep.subr.bf16.mxu1 %v6428_v50 }
 0x495   : > { %4610 = vmatmul.mubr.bf16.vlgmr.msra.gmra.mrb[16].mxu1 %v7192_v26  ;;  %v6443_v26 = vld [vmem:[#allocation5 + $0x4ac] ss:$28 sps:$4 sm:$0xff]  }
 0x496   : > { %4732 = vmatmul.mubr.bf16.vlgmr.msra.gmra.mrb[16].mxu0 %v7209_v44  ;;  %4619 = vmatpush1.bf16.msra.mxu1 %v6426_v51 }
 0x497   : > { %4650 = vmatprep.mubr.bf16.mxu1 %v7202_v0  ;;  %4620 = vmatprep.subr.bf16.mxu1 %v6431_v52  ;;  %v6444_v0 = vld [vmem:[#allocation5 + $0x4e0] ss:$28 sps:$4 sm:$0xff]  }
 0x49a   : > { %4621 = vmatpush1.bf16.msra.mxu1 %v6429_v53 }
 0x49b   : > { %4622 = vmatprep.subr.bf16.mxu1 %v6434_v54 }
 0x49e   : > { %4623 = vmatpush1.bf16.msra.mxu1 %v6432_v55 }
 0x49f   : > { %4624 = vmatprep.subr.bf16.mxu1 %v6437_v56 }
 0x4a2   : > { %4625 = vmatpush1.bf16.msra.mxu1 %v6435_v57  ;;  %v3252_v57 = vsub.s32 6, %v6960_v18 }
 0x4a3   : > { %4626 = vmatprep.subr.bf16.mxu1 %v6440_v58 }
 0x4a4   : > { %v3253_v58 = vrot.slane %v7224_v23, %v3252_v57 }
 0x4a6   : > { %4627 = vmatpush1.bf16.msra.mxu1 %v6438_v24 }
 0x4a7   : > { %4628 = vmatprep.subr.bf16.mxu1 %v6443_v26 }
 0x4aa   : > { %4629 = vmatpush1.bf16.msra.mxu1 %v6441_v59 }
 0x4ab   : > { %4630 = vmatprep.subr.bf16.mxu1 %v6446_v60 }
 0x4ae   : > { %4631 = vmatpush1.bf16.msra.mxu1 %v6444_v0 }
 0x4af   : > { %4632 = vmatprep.subr.bf16.mxu1 %v6449_v61 }
 0x4b2   : > { %4633 = vmatpush1.bf16.msra.mxu1 %v6447_v62 }
 0x4b3   : > { %4634 = vmatprep.subr.bf16.mxu1 %v6452_v63 }
 0x4b6   : > { %4635 = vmatpush1.bf16.msra.mxu1 %v6450_v1 }
 0x4b7   : > { %4636 = vmatprep.subr.bf16.mxu1 %v6455_v2 }
 0x4ba   : > { %4637 = vmatpush1.bf16.msra.mxu1 %v6453_v3 }
 0x4bb   : > { %4638 = vmatprep.subr.bf16.mxu1 %v6458_v5  ;;  %v3244_v5 = vsub.s32 4, %v6960_v18 }
 0x4be   : > { %4639 = vmatpush1.bf16.msra.mxu1 %v6456_v6  ;;  %v3248_v6 = vsub.s32 5, %v6960_v18 }
 0x4bf   : > { %4640 = vmatprep.subr.bf16.mxu1 %v6461_v7  ;;  %v3245_v7 = vrot.slane %v7224_v23, %v3244_v5 }
 0x4c2   : > { %4641 = vmatpush1.bf16.msra.mxu1 %v6459_v9  ;;  %v3249_v9 = vrot.slane %v7224_v23, %v3248_v6 }
 0x4c3   : > { %4642 = vmatprep.subr.bf16.mxu1 %v6464_v10 }
 0x4c6   : > { %4643 = vmatpush1.bf16.msra.mxu1 %v6462_v12 }
 0x4c7   : > { %4644 = vmatprep.subr.bf16.mxu1 %v6467_v13 }
 0x4ca   : > { %4645 = vmatpush1.bf16.msra.mxu1 %v6465_v14 }
 0x4cb   : > { %4646 = vmatprep.subr.bf16.mxu1 %v6470_v15 }
 0x4ce   : > { %4647 = vmatpush1.bf16.msra.mxu1 %v6468_v16 }
 0x4cf   : > { %4648 = vmatprep.subr.bf16.mxu1 %v6473_v17 }
 0x4d2   : > { %4649 = vmatpush1.bf16.msra.mxu1 %v6471_v20 }
 0x4d5   : > { %4651 = vmatmul.mubr.bf16.vlgmr.msra.gmra.mrb[16].mxu1 %v7209_v44 }
 0x528   : > { %v4488_v29 = vpop.f32.mrb[12].mxu1  ;;  %v4570_v30 = vpop.f32.mrb[8].mxu0 }
 0x529   : > { %v5553_v44 = vadd.f32 %v4488_v29, %v3229_v22  ;;  %v5555_v31 = vadd.f32 %v4570_v30, %v3237_v25  ;;  %v4490_v32 = vpop.f32.mrb[13].mxu1  ;;  %v4572_v33 = vpop.f32.mrb[9].mxu0 }
 0x52a   : > { %v5554_v34 = vadd.f32 %v4490_v32, %v3233_v27  ;;  %v5556_v35 = vadd.f32 %v4572_v33, %v3241_v28  ;;  %v4492_v36 = vpop.f32.mrb[14].mxu1  ;;  %v4574_v37 = vpop.f32.mrb[10].mxu0 }
 0x52b   : > { %v5492_v19 = vmul.f32 -1.442695, %v5553_v44  ;;  %v5494_v38 = vmul.f32 -1.442695, %v5555_v31  ;;  %v4493_v39 = vpop.f32.mrb[15].mxu1  ;;  %v4575_v4 = vpop.f32.mrb[11].mxu0 }
 0x52c   : > { %v5493_v40 = vmul.f32 -1.442695, %v5554_v34  ;;  %v5495_v21 = vmul.f32 -1.442695, %v5556_v35 }
 0x52d   : > { %6476 = vpow2.f32 %v5492_v19 }
 0x52e   : > { %6478 = vpow2.f32 %v5494_v38 }
 0x52f   : > { %6480 = vpow2.f32 %v5493_v40 }
 0x530   : > { %6482 = vpow2.f32 %v5495_v21 }
 0x537   : > { %v6477_v11 = vpop.eup %6476 }
 0x538   : > { %v6479_v41 = vpop.eup %6478  ;;  %v4760_v8 = vadd.f32 1.0, %v6477_v11 }
 0x539   : > { %v6481_v42 = vpop.eup %6480  ;;  %v4762_v43 = vadd.f32 1.0, %v6479_v41 }
 0x53a   : > { %v6483_v45 = vpop.eup %6482  ;;  %6484 = vrcp.f32 %v4760_v8  ;;  %v4761_v46 = vadd.f32 1.0, %v6481_v42 }
 0x53b   : > { %6486 = vrcp.f32 %v4762_v43  ;;  %v4763_v47 = vadd.f32 1.0, %v6483_v45 }
 0x53c   : > { %6488 = vrcp.f32 %v4761_v46 }
 0x53d   : > { %6490 = vrcp.f32 %v4763_v47 }
 0x544   : > { %v6485_v48 = vpop.eup %6484 }
 0x545   : > { %v6487_v49 = vpop.eup %6486  ;;  %4781 = vst [vmem:[%s7237_s15] sm:$0xff] %v6485_v48 }
 0x546   : > { %v6489_v50 = vpop.eup %6488  ;;  %4783 = vst [vmem:[%s7237_s15 + $0x10] sm:$0xff] %v6487_v49 }
 0x547   : > { %v6491_v51 = vpop.eup %6490  ;;  %4782 = vst [vmem:[%s7237_s15 + $0x8] sm:$0xff] %v6489_v50 }
 0x548   : > { %4784 = vst [vmem:[%s7237_s15 + $0x18] sm:$0xff] %v6491_v51 }
 0x549   : > { %v5519_v52 = vpop.f32.mrb[12].mxu0 }
 0x54a   : > { %v5520_v53 = vpop.f32.mrb[13].mxu0 }
 0x54b   : > { %v5521_v54 = vadd.f32 %v5520_v53, %v5519_v52  ;;  %v5522_v55 = vpop.f32.mrb[14].mxu0 }
 0x54c   : > { %v5523_v56 = vpop.f32.mrb[15].mxu0 }
 0x54d   : > { %v4694_v59 = vadd.f32 %v5521_v54, %v3253_v58 }
 0x569   : > { %v5541_v24 = vpop.f32.mrb[16].mxu0 }
 0x56a   : > { %v5542_v26 = vpop.f32.mrb[17].mxu0 }
 0x56b   : > { %v5543_v60 = vadd.f32 %v5542_v26, %v5541_v24  ;;  %v5544_v0 = vpop.f32.mrb[18].mxu0 }
 0x56c   : > { %v5545_v61 = vpop.f32.mrb[19].mxu0 }
 0x56d   : > { %v4734_v62 = vadd.f32 %v5543_v60, %v4694_v59 }
 0x56f   : > { %v5498_v63 = vmul.f32 -1.442695, %v4734_v62 }
 0x571   : > { %6492 = vpow2.f32 %v5498_v63 }
 0x57b   : > { %v6493_v1 = vpop.eup %6492 }
 0x57c   : > { %v4766_v2 = vadd.f32 1.0, %v6493_v1 }
 0x57e   : > { %6494 = vrcp.f32 %v4766_v2 }
 0x588   : > { %v6495_v3 = vpop.eup %6494 }
 0x589   : > { %4787 = vst [vmem:[%s7237_s15 + $0x30] sm:$0xff] %v6495_v3 }
 0x5a8   : > { %v4652_v10 = vpop.f32.mrb[16].mxu1 }
 0x5a9   : > { %v5557_v12 = vadd.f32 %v4652_v10, %v3245_v7  ;;  %v4654_v13 = vpop.f32.mrb[17].mxu1 }
 0x5aa   : > { %v5558_v14 = vadd.f32 %v4654_v13, %v3249_v9  ;;  %v4656_v15 = vpop.f32.mrb[18].mxu1 }
 0x5ab   : > { %v5496_v16 = vmul.f32 -1.442695, %v5557_v12  ;;  %v4657_v17 = vpop.f32.mrb[19].mxu1 }
 0x5ac   : > { %v5497_v20 = vmul.f32 -1.442695, %v5558_v14 }
 0x5ad   : > { %6496 = vpow2.f32 %v5496_v16 }
 0x5ae   : > { %6498 = vpow2.f32 %v5497_v20 }
 0x5b7   : > { %v6497_v18 = vpop.eup %6496 }
 0x5b8   : > { %v6499_v22 = vpop.eup %6498  ;;  %v4764_v25 = vadd.f32 1.0, %v6497_v18 }
 0x5b9   : > { %v4765_v23 = vadd.f32 1.0, %v6499_v22 }
 0x5ba   : > { %6500 = vrcp.f32 %v4764_v25 }
 0x5bb   : > { %6502 = vrcp.f32 %v4765_v23 }
 0x5c4   : > { %v6501_v27 = vpop.eup %6500 }
 0x5c5   : > { %v6503_v28 = vpop.eup %6502  ;;  %4785 = vst [vmem:[%s7237_s15 + $0x20] sm:$0xff] %v6501_v27 }
 0x5c6   : > { %4786 = vst [vmem:[%s7237_s15 + $0x28] sm:$0xff] %v6503_v28 }
 0x5c7   : > { %6573 = shalt.err (!%p6570_p11)
}
 0x5c8   : > { %s6574_s23 = scalar_lea.hbm %s7255_s25, 896  ;;  %s6578_s29 = scalar_lea.hbm %s7311_s10, 2688 }
 0x5c9   : > { %p6575_p13 = scmp.ne.s32.totalorder %s7255_s25, %s6574_s23  ;;  %p6579_p6 = scmp.lt.u32.totalorder %s7255_s25, %s7311_s10 }
 0x5ca   : > { %p6580_p9 = scmp.lt.u32.totalorder %s6578_s29, %s6574_s23  ;;  %p6582_p10 = scmp.lt.u32.totalorder %s6574_s23, %s7255_s25 }
 0x5cb   : > { %p6576_p0 = pnand %p6575_p13, %p7335_p1 }
 0x5cc   : > { %p6581_p12 = por %p6580_p9, %p6579_p6 }
 0x5cd   : > { %p6577_p5 = pneg %p6576_p0 }
 0x5ce   : > { %p6583_p2 = por %p6582_p10, %p6581_p12 }
 0x5d0   : > { %p6584_p3 = pnand %p6583_p2, %p6577_p5 }
 0x5d2   : > { %6587 = shalt.err (!%p6584_p3)
}
 0x5d3   : > { %5610 = dma.vmem_to_hbm [thread:$0]  (%p7335_p1), %s7257_s19, 896, %s7255_s25, %s4789_s30  }
 0x5d4 PF: > { %s7336_s22 = sld [smem:[#allocation11_spill]]  ;;  %s7337_s26 = sld [smem:[#allocation15_spill]] }
 0x5d5   : > { %p5627_p4 = scmp.ge.s32.totalorder %s6630_s20, 2 }
 0x5da   : > { %s4823_s24 = sand.u32 1, %s7336_s22   ;;  %p7338_p7 = scmp.ne.s32.totalorder %s7337_s26, 0 }
 0x5db   : > { %s4824_s14 = scalar_lea.sflag [#allocation4], %s4823_s24 }
 0x5dc   : > { %p5620_p8 = pnand %p5627_p4, %p7338_p7 }
 0x5de   : > { %6613 = dma.done.wait (!%p5620_p8), %s4824_s14, 896  }
 0x5df   : > { %6615 = vsyncadd (!%p5620_p8), %s4824_s14, 4294966400  ;;  %s7339_s20 = sld [smem:[#allocation13_spill]]  ;;  %s7340_s21 = sld [smem:[#allocation12_spill]] }
 0x5e0   : > { %s7341_s19 = sld [smem:[#allocation14_spill]]  ;;  %s7342_s17 = smov %s6622_s18 }
 0x5e5   : > { %p24_p11 = scmp.ge.s32.totalorder %s7339_s20, 5   ;;  %s7343_s18 = smov %s7340_s21 }
 0x5e7   :  { %26 = sbr.rel (!%p24_p11) target bundleno = 5 (0x5), region = 119 }
 0x5ee   :  { %4837 = vsyncpa [#allocation3], 1 }
 0x5ef   :  { %4839 = vsyncpa [#allocation3 + $0x1], 1 }
 0x5f0   :  { %4840 = vsyncpa [#allocation6], 1 }
 0x5f1   :  { %4841 = vsyncpa [#allocation4], 1 }
 0x5f2   :  { %4843 = vsyncpa [#allocation4 + $0x1], 1 }

</bundles_post_ra>
